<compile_context>
chip_gen: v7x
topology: tpu7x:2x2x1
jax: 0.10.0
libtpu: 0.0.40
codegen_flags: <defaults>
</compile_context>

<pallas_src>
import functools

import jax
import jax.numpy as jnp
from jax.experimental import pallas as pl
from jax.experimental.pallas import tpu as pltpu


def _knn_kernel(xT_ref, w0_ref, b0_ref, w1_ref, b1_ref, wo_ref, bo_ref, o_ref,
                *, num_fc):
    # fc_0: [neurons, num_inputs] @ [num_inputs, TILE_M] -> [neurons, TILE_M]
    h = jnp.dot(w0_ref[...], xT_ref[...],
                preferred_element_type=jnp.float32) + b0_ref[...]
    h = jnp.maximum(h, 0.0)

    # fc_layer: the SAME Linear(neurons, neurons)+ReLU applied num_fc times.
    # w1 / b1 are read once; b1 is a single [neurons, 1] broadcast vreg reused
    # across the statically unrolled iterations.
    w1 = w1_ref[...]
    b1 = b1_ref[...]
    for _ in range(num_fc):
        h = jnp.dot(w1, h.astype(w1.dtype),
                    preferred_element_type=jnp.float32) + b1
        h = jnp.maximum(h, 0.0)

    # output: Linear(neurons, 1) as [1, neurons] @ [neurons, TILE_M] -> a
    # lane-major [1, TILE_M] row, stored directly (no relayout).
    out = jnp.dot(wo_ref[...], h.astype(wo_ref.dtype),
                  preferred_element_type=jnp.float32) + bo_ref[0, 0]
    o_ref[...] = out.astype(o_ref.dtype)

    # TODO(synk): training-mode Dropout (random masking) intentionally omitted;
    # forward here matches eval() semantics.


def _auto_tile_m(n, num_inputs, neurons, itemsize):
    """Pick the lane extent (batch columns) per grid step."""
    n_pad128 = pl.cdiv(n, 128) * 128
    # Rough per-column VMEM footprint: double-buffered x slab, a few live f32
    # activation copies, the lane-major output row.
    per_col = 2 * num_inputs * itemsize + 3 * neurons * 4 + 2 * 4
    budget = 10 << 20            # stays under v5e's 16 MiB default scoped VMEM
    max_tile = max(256, (budget // per_col) // 256 * 256)
    if n_pad128 <= max_tile:
        return n_pad128          # single grid step: no per-step overhead
    # Tiled: even number of steps (balanced across v7x's two TensorCores),
    # 256-multiple tiles (full MXU output passes), minimal padding.
    steps = 2 * pl.cdiv(n_pad128, 2 * max_tile)
    return pl.cdiv(n_pad128, steps * 256) * 256


def knn_forward(x, params, *, num_fc=1, tile_m=None,
                compute_dtype=jnp.bfloat16):
    """x: [N, num_inputs] float32. params: dict of PyTorch-layout weights."""
    n, num_inputs = x.shape
    neurons = params["w0"].shape[0]
    itemsize = jnp.dtype(compute_dtype).itemsize

    if tile_m is None:
        tile_m = _auto_tile_m(n, num_inputs, neurons, itemsize)
    if tile_m % 128 != 0:
        raise ValueError("tile_m must be a multiple of 128 (lane tiling).")

    # F.normalize(x, dim=-2, p=2): column L2 norm over the FULL batch, applied
    # in f32 before the cast/transpose (XLA fuses normalize+transpose+cast into
    # one pass over x).  NOTE: assumes the whole batch is presented in one call.
    x32 = x.astype(jnp.float32)
    colnorm = jnp.maximum(
        jnp.sqrt(jnp.sum(x32 * x32, axis=0, keepdims=True)), 1e-12)
    xT = (x32 / colnorm).T.astype(compute_dtype)          # [num_inputs, N]

    # Weights stay in PyTorch [out, in] layout (transposed compute).
    w0_c = params["w0"].astype(compute_dtype)              # [neurons, in]
    b0 = params["b0"].reshape(neurons, 1).astype(jnp.float32)
    w1_c = params["w1"].astype(compute_dtype)              # [neurons, neurons]
    b1 = params["b1"].reshape(neurons, 1).astype(jnp.float32)
    wo_c = params["wo"].reshape(1, neurons).astype(compute_dtype)
    bo = params["bo"].reshape(1, 1).astype(jnp.float32)    # SMEM scalar

    # Pad the batch (lane) axis to a multiple of tile_m; padded columns are
    # zeros and are sliced off below.
    grid_m = pl.cdiv(n, tile_m)
    n_pad = grid_m * tile_m
    if n_pad != n:
        xT = jnp.pad(xT, ((0, 0), (0, n_pad - n)))

    cost = pl.CostEstimate(
        flops=2 * n_pad * (num_inputs * neurons
                           + num_fc * neurons * neurons + neurons),
        transcendentals=0,
        bytes_accessed=(n_pad * num_inputs * itemsize
                        + (num_inputs + num_fc * neurons + 1) * neurons * itemsize
                        + n_pad * 4),
    )

    kernel = functools.partial(_knn_kernel, num_fc=num_fc)

    out_row = pl.pallas_call(
        kernel,
        out_shape=jax.ShapeDtypeStruct((1, n_pad), jnp.float32),
        grid=(grid_m,),
        in_specs=[
            pl.BlockSpec((num_inputs, tile_m), lambda i: (0, i)),    # xT tile
            pl.BlockSpec((neurons, num_inputs), lambda i: (0, 0)),   # w0 (resident)
            pl.BlockSpec((neurons, 1), lambda i: (0, 0)),            # b0
            pl.BlockSpec((neurons, neurons), lambda i: (0, 0)),      # w1
            pl.BlockSpec((neurons, 1), lambda i: (0, 0)),            # b1
            pl.BlockSpec((1, neurons), lambda i: (0, 0)),            # wo row
            pl.BlockSpec(memory_space=pltpu.MemorySpace.SMEM),       # bo scalar
        ],
        out_specs=pl.BlockSpec((1, tile_m), lambda i: (0, i)),       # lane-major
        compiler_params=pltpu.CompilerParams(
            dimension_semantics=("parallel",),
        ),
        cost_estimate=cost,
    )(xT, w0_c, b0, w1_c, b1, wo_c, bo)

    return out_row.reshape(n_pad)[:n].reshape(n, 1)


def init_params(key, num_inputs, neurons):
    """Deterministic PyTorch-style uniform(-1/sqrt(fan_in), 1/sqrt(fan_in))."""
    ks = jax.random.split(key, 6)

    def lin(kw, kb, fan_in, fan_out):
        bound = 1.0 / jnp.sqrt(jnp.float32(fan_in))
        w = jax.random.uniform(kw, (fan_out, fan_in), jnp.float32, -bound, bound)
        b = jax.random.uniform(kb, (fan_out,), jnp.float32, -bound, bound)
        return w, b

    w0, b0 = lin(ks[0], ks[1], num_inputs, neurons)
    w1, b1 = lin(ks[2], ks[3], neurons, neurons)
    wo, bo = lin(ks[4], ks[5], neurons, 1)
    return {"w0": w0, "b0": b0, "w1": w1, "b1": b1, "wo": wo, "bo": bo}


def reference_forward(x, params, *, num_fc=1):
    norm = jnp.maximum(jnp.linalg.norm(x, axis=-2, keepdims=True), 1e-12)
    h = x / norm
    h = jnp.maximum(h @ params["w0"].T + params["b0"], 0.0)
    for _ in range(num_fc):
        h = jnp.maximum(h @ params["w1"].T + params["b1"], 0.0)
    return h @ params["wo"].T + params["bo"]


if __name__ == "__main__":
    key = jax.random.PRNGKey(0)
    k_x, k_p = jax.random.split(key)

    N, NUM_INPUTS, NEURONS, NUM_FC = 2500, 8, 32, 2

    x = jax.random.normal(k_x, (N, NUM_INPUTS), jnp.float32)
    params = init_params(k_p, NUM_INPUTS, NEURONS)

    ref = reference_forward(x, params, num_fc=NUM_FC)

    # f32 MXU path, auto tile (single grid step for this N): tight check.
    out_f32 = jax.block_until_ready(
        knn_forward(x, params, num_fc=NUM_FC, compute_dtype=jnp.float32))
    assert out_f32.shape == (N, 1)
    assert jnp.allclose(out_f32, ref, atol=1e-4, rtol=1e-4)

    # f32, forced multi-step (grid=2, even for v7x): exercises the pipeline.
    out_f32_t = jax.block_until_ready(
        knn_forward(x, params, num_fc=NUM_FC, tile_m=1280,
                    compute_dtype=jnp.float32))
    assert jnp.allclose(out_f32_t, ref, atol=1e-4, rtol=1e-4)

    # Default bf16 MXU-input path (all generations): f32 accumulation,
    # looser tolerance.
    out_bf16 = jax.block_until_ready(
        knn_forward(x, params, num_fc=NUM_FC))
    assert out_bf16.shape == (N, 1)
    assert jnp.allclose(out_bf16, ref, atol=7.5e-2, rtol=7.5e-2)

    print("KERNEL_OK")
</pallas_src>

<mosaic_0001>
module attributes {stable_mosaic.version = 11 : i64} {
  func.func @_knn_kernel(%arg0: i32, %arg1: memref<8x2560xf32, #tpu.memory_space<vmem>>, %arg2: memref<32x8xf32, #tpu.memory_space<vmem>>, %arg3: memref<32x1xf32, #tpu.memory_space<vmem>>, %arg4: memref<32x32xf32, #tpu.memory_space<vmem>>, %arg5: memref<32x1xf32, #tpu.memory_space<vmem>>, %arg6: memref<1x32xf32, #tpu.memory_space<vmem>>, %arg7: memref<1x1xf32, #tpu.memory_space<smem>>, %arg8: memref<1x2560xf32, #tpu.memory_space<vmem>>) attributes {dimension_semantics = [#tpu.dimension_semantics<parallel>], iteration_bounds = array<i64: 1>, scalar_prefetch = 0 : i64, scratch_operands = 0 : i64, tpu.core_type = #tpu.core_type<tc>, window_params = [{transform_indices = @transform_0, window_bounds = array<i64: 8, 2560>}, {pipeline_mode = #tpu.pipeline_mode<synchronous>, transform_indices = @transform_1, window_bounds = array<i64: 32, 8>}, {pipeline_mode = #tpu.pipeline_mode<synchronous>, transform_indices = @transform_2, window_bounds = array<i64: 32, 1>}, {pipeline_mode = #tpu.pipeline_mode<synchronous>, transform_indices = @transform_3, window_bounds = array<i64: 32, 32>}, {pipeline_mode = #tpu.pipeline_mode<synchronous>, transform_indices = @transform_4, window_bounds = array<i64: 32, 1>}, {pipeline_mode = #tpu.pipeline_mode<synchronous>, transform_indices = @transform_5, window_bounds = array<i64: 1, 32>}, {transform_indices = @transform_6, window_bounds = array<i64: 1, 1>}, {transform_indices = @transform_7, window_bounds = array<i64: 1, 2560>}]} {
    %c0 = arith.constant 0 : index
    %c0_0 = arith.constant 0 : index
    %0 = vector.load %arg2[%c0, %c0_0] : memref<32x8xf32, #tpu.memory_space<vmem>>, vector<32x8xf32>
    %c0_1 = arith.constant 0 : index
    %c0_2 = arith.constant 0 : index
    %1 = vector.load %arg1[%c0_1, %c0_2] : memref<8x2560xf32, #tpu.memory_space<vmem>>, vector<8x2560xf32>
    %cst = arith.constant dense<0.000000e+00> : vector<32x2560xf32>
    %2 = tpu.matmul %0, %1, %cst {dimension_numbers = #tpu.dot_dimension_numbers<[1], [0], [0], [1], [0, 0, 1, 1], [], []>} : vector<32x8xf32>, vector<8x2560xf32>, vector<32x2560xf32> -> vector<32x2560xf32>
    %c0_3 = arith.constant 0 : index
    %c0_4 = arith.constant 0 : index
    %3 = vector.load %arg3[%c0_3, %c0_4] : memref<32x1xf32, #tpu.memory_space<vmem>>, vector<32x1xf32>
    %4 = vector.broadcast %3 : vector<32x1xf32> to vector<32x2560xf32>
    %5 = arith.addf %2, %4 : vector<32x2560xf32>
    %cst_5 = arith.constant 0.000000e+00 : f32
    %6 = vector.broadcast %cst_5 : f32 to vector<32x2560xf32>
    %7 = arith.maximumf %5, %6 : vector<32x2560xf32>
    %c0_6 = arith.constant 0 : index
    %c0_7 = arith.constant 0 : index
    %8 = vector.load %arg4[%c0_6, %c0_7] : memref<32x32xf32, #tpu.memory_space<vmem>>, vector<32x32xf32>
    %c0_8 = arith.constant 0 : index
    %c0_9 = arith.constant 0 : index
    %9 = vector.load %arg5[%c0_8, %c0_9] : memref<32x1xf32, #tpu.memory_space<vmem>>, vector<32x1xf32>
    %cst_10 = arith.constant dense<0.000000e+00> : vector<32x2560xf32>
    %10 = tpu.matmul %8, %7, %cst_10 {dimension_numbers = #tpu.dot_dimension_numbers<[1], [0], [0], [1], [0, 0, 1, 1], [], []>} : vector<32x32xf32>, vector<32x2560xf32>, vector<32x2560xf32> -> vector<32x2560xf32>
    %11 = vector.broadcast %9 : vector<32x1xf32> to vector<32x2560xf32>
    %12 = arith.addf %10, %11 : vector<32x2560xf32>
    %cst_11 = arith.constant 0.000000e+00 : f32
    %13 = vector.broadcast %cst_11 : f32 to vector<32x2560xf32>
    %14 = arith.maximumf %12, %13 : vector<32x2560xf32>
    %cst_12 = arith.constant dense<0.000000e+00> : vector<32x2560xf32>
    %15 = tpu.matmul %8, %14, %cst_12 {dimension_numbers = #tpu.dot_dimension_numbers<[1], [0], [0], [1], [0, 0, 1, 1], [], []>} : vector<32x32xf32>, vector<32x2560xf32>, vector<32x2560xf32> -> vector<32x2560xf32>
    %16 = vector.broadcast %9 : vector<32x1xf32> to vector<32x2560xf32>
    %17 = arith.addf %15, %16 : vector<32x2560xf32>
    %cst_13 = arith.constant 0.000000e+00 : f32
    %18 = vector.broadcast %cst_13 : f32 to vector<32x2560xf32>
    %19 = arith.maximumf %17, %18 : vector<32x2560xf32>
    %c0_14 = arith.constant 0 : index
    %c0_15 = arith.constant 0 : index
    %20 = vector.load %arg6[%c0_14, %c0_15] : memref<1x32xf32, #tpu.memory_space<vmem>>, vector<1x32xf32>
    %cst_16 = arith.constant dense<0.000000e+00> : vector<1x2560xf32>
    %21 = tpu.matmul %20, %19, %cst_16 {dimension_numbers = #tpu.dot_dimension_numbers<[1], [0], [0], [1], [0, 0, 1, 1], [], []>} : vector<1x32xf32>, vector<32x2560xf32>, vector<1x2560xf32> -> vector<1x2560xf32>
    %c0_17 = arith.constant 0 : index
    %c0_18 = arith.constant 0 : index
    %22 = memref.load %arg7[%c0_17, %c0_18] : memref<1x1xf32, #tpu.memory_space<smem>>
    %23 = vector.broadcast %22 : f32 to vector<1x2560xf32>
    %24 = arith.addf %21, %23 : vector<1x2560xf32>
    %c0_19 = arith.constant 0 : index
    %c0_20 = arith.constant 0 : index
    %25 = vector.load %arg8[%c0_19, %c0_20] : memref<1x2560xf32, #tpu.memory_space<vmem>>, vector<1x2560xf32>
    tpu.vector_store %arg8[%c0_19, %c0_20], %24 {strides = array<i32>} : memref<1x2560xf32, #tpu.memory_space<vmem>>, vector<1x2560xf32>,
    return
  }
  func.func @transform_0(%arg0: i32) -> (i32, i32) {
    %c0_i32 = arith.constant 0 : i32
    %c0_i32_0 = arith.constant 0 : i32
    return %c0_i32, %arg0 : i32, i32
  }
  func.func @transform_1(%arg0: i32) -> (i32, i32) {
    %c0_i32 = arith.constant 0 : i32
    %c0_i32_0 = arith.constant 0 : i32
    %c0_i32_1 = arith.constant 0 : i32
    return %c0_i32, %c0_i32_0 : i32, i32
  }
  func.func @transform_2(%arg0: i32) -> (i32, i32) {
    %c0_i32 = arith.constant 0 : i32
    %c0_i32_0 = arith.constant 0 : i32
    %c0_i32_1 = arith.constant 0 : i32
    return %c0_i32, %c0_i32_0 : i32, i32
  }
  func.func @transform_3(%arg0: i32) -> (i32, i32) {
    %c0_i32 = arith.constant 0 : i32
    %c0_i32_0 = arith.constant 0 : i32
    %c0_i32_1 = arith.constant 0 : i32
    return %c0_i32, %c0_i32_0 : i32, i32
  }
  func.func @transform_4(%arg0: i32) -> (i32, i32) {
    %c0_i32 = arith.constant 0 : i32
    %c0_i32_0 = arith.constant 0 : i32
    %c0_i32_1 = arith.constant 0 : i32
    return %c0_i32, %c0_i32_0 : i32, i32
  }
  func.func @transform_5(%arg0: i32) -> (i32, i32) {
    %c0_i32 = arith.constant 0 : i32
    %c0_i32_0 = arith.constant 0 : i32
    %c0_i32_1 = arith.constant 0 : i32
    return %c0_i32, %c0_i32_0 : i32, i32
  }
  func.func @transform_6(%arg0: i32) -> (i32, i32) {
    %c0_i32 = arith.constant 0 : i32
    %c0_i32_0 = arith.constant 0 : i32
    %c0_i32_1 = arith.constant 0 : i32
    return %c0_i32, %c0_i32_0 : i32, i32
  }
  func.func @transform_7(%arg0: i32) -> (i32, i32) {
    %c0_i32 = arith.constant 0 : i32
    %c0_i32_0 = arith.constant 0 : i32
    return %c0_i32, %arg0 : i32, i32
  }
}

</mosaic_0001>

<bundles_post_ra>
// kernel: tpu_custom_call.1
= control target key start
LH: loop header
LB: loop body
LE: loop exit
PB: predicated region body
PF: predicated region fallthrough
CT: control target
= control target key end

     0   :  { %13 = vsyncpa [#allocation4], 0  ;;  %s5212_s0 = inlined_call_operand.hbm [shape: f32[8,2560], index: 0, kind: input, shape index: {}]   ;;  %s5213_s1 = inlined_call_operand.vmem [shape: f32[32,8], index: 1, kind: input, shape index: {}]   ;;  %s5214_s2 = inlined_call_operand.vmem [shape: f32[32,1], index: 2, kind: input, shape index: {}]   ;;  %s5215_s3 = inlined_call_operand.vmem [shape: f32[32,32], index: 3, kind: input, shape index: {}]   ;;  %s5216_s4 = inlined_call_operand.vmem [shape: f32[32,1], index: 4, kind: input, shape index: {}]   ;;  %s5217_s5 = inlined_call_operand.vmem [shape: f32[1,32], index: 5, kind: input, shape index: {}]   ;;  %s5218_s6 = inlined_call_operand.<no memory space> [shape: f32[1,1], index: 6, kind: input, shape index: {}]   ;;  %s5219_s7 = inlined_call_operand.hbm [shape: f32[1,2560], index: 7, kind: output, shape index: {}]  }
   0x1   :  { %14 = vsyncpa [#allocation5], 0  ;;  %s4364_s24 = smov [#allocation3]   ;;  %s4316_s28 = scalar_lea.hbm %s5212_s0, 2560 }
   0x2   :  { %s21_s25 = sshll.u32 %s4364_s24, 4  ;;  %p4317_p0 = scmp.ne.s32.totalorder %s5212_s0, %s4316_s28  ;;  %s22_s25 = int_to_ptr.vmem [resolvable:$true] %s21_s25 }
   0x3   :  { %p4320_p1 = scmp.lt.u32.totalorder %s4316_s28, %s5212_s0 }
   0x5   :  { %p4322_p2 = pnand %p4320_p1, %p4317_p0 }
   0x7   :  { %4325 = shalt.err (!%p4322_p2)
}
   0x8   :  { %s4326_s10 = scalar_lea.vmem %s22_s25, 2560  ;;  %p4331_p4 = scmp.lt.s32.totalorder %s22_s25, %s22_s25 }
   0x9   :  { %p4327_p3 = scmp.ne.s32.totalorder %s22_s25, %s4326_s10  ;;  %p4332_p5 = scmp.lt.s32.totalorder %s4326_s10, %s4326_s10 }
   0xb   :  { %p4333_p6 = por %p4332_p5, %p4331_p4 }
   0xd   :  { %p4334_p7 = pnand %p4333_p6, %p4327_p3 }
   0xf   :  { %4337 = shalt.err (!%p4334_p7)
}
  0x10   :  { %24 = dma.hbm_to_vmem [thread:$0]  %s5212_s0, 2560, %s22_s25, [#allocation4]  }
  0x11   :  { %4360 = dma.done.wait [#allocation4], 2560  }
  0x12   :  { %4361 = vsyncadd [#allocation4], 4294964736  ;;  %v4365_v0 = vmov 0.0   ;;  %v4366_v1 = vmov 0   ;;  %v45_v2 = vld [vmem:[#allocation3 + $0x8] sm:$0xff]  ;;  %v47_v3 = vld [vmem:[#allocation3 + $0x18] sm:$0xff] }
  0x13   :  { %165 = vmatprep.mubr.f32.mxu0 %v4365_v0  ;;  %254 = vmatprep.mubr.f32.mxu1 %v4365_v0  ;;  %v44_v4 = vld [vmem:[#allocation3] sm:$0xff]  ;;  %vm88_vm0 = vcmask 64512   ;;  %v46_v5 = vld [vmem:[#allocation3 + $0x10] sm:$0xff]  ;;  %v49_v7 = vld [vmem:[#allocation3 + $0x28] sm:$0xff]  ;;  %vm1099_vm1 = vcmask 261120  }
  0x14   :  { %4310 = vset.pattern.permute.xlu0 %v4366_v1  ;;  %4311 = vset.pattern.permute.xlu1 %v4366_v1  ;;  %v4426_v6 = vld [vmem:[%s5213_s1] sm:$0xff]  ;;  %v51_v8 = vld [vmem:[#allocation3 + $0x38] sm:$0xff]  ;;  %v50_v10 = vld [vmem:[#allocation3 + $0x30] sm:$0xff] }
  0x15   :  { %101 = vmatprep.subr.mxu0 %v45_v2  ;;  %190 = vmatprep.subr.mxu1 %v47_v3  ;;  %v48_v9 = vld [vmem:[#allocation3 + $0x20] sm:$0xff]  ;;  %v4437_v11 = vld [vmem:[%s5213_s1 + $0x8] sm:$0xff]  ;;  %v55_v13 = vld [vmem:[#allocation3 + $0x58] sm:$0xff] }
  0x16   :  { %102 = vmatpush1.msra.mxu0 %v44_v4  ;;  %191 = vmatpush1.msra.mxu1 %v46_v5  ;;  %v53_v12 = vld [vmem:[#allocation3 + $0x48] sm:$0xff]  ;;  %v4448_v14 = vld [vmem:[%s5213_s1 + $0x10] sm:$0xff]  ;;  %v64_v15 = vld [vmem:[%s5214_s2] sm:$0xff] }
  0x17   :  { %3935 = vmatmul.mubr.msk.f32.vlgmr.msra.gmra.mrb[0].mxu0 %vm88_vm0, %v4426_v6  ;;  %3939 = vmatmul.mubr.msk.f32.vlgmr.msra.gmra.mrb[0].mxu1 %vm88_vm0, %v4426_v6  ;;  %v66_v16 = vld [vmem:[%s5214_s2 + $0x10] sm:$0xff]  ;;  %v65_v17 = vld [vmem:[%s5214_s2 + $0x8] sm:$0xff]  ;;  %v67_v18 = vld [vmem:[%s5214_s2 + $0x18] sm:$0xff] }
  0x18   :  { %171 = vmatprep.mubr.f32.mxu0 %v4365_v0  ;;  %260 = vmatprep.mubr.f32.mxu1 %v4365_v0  ;;  %v4471_v19 = vld [vmem:[%s5213_s1 + $0x18] sm:$0xff]  ;;  %v1075_v20 = vld [vmem:[%s5216_s4] sm:$0xff]  ;;  %v1076_v21 = vld [vmem:[%s5216_s4 + $0x8] sm:$0xff] }
  0x19   :  { %279 = vmatprep.subr.mxu0 %v49_v7  ;;  %368 = vmatprep.subr.mxu1 %v51_v8  ;;  %v52_v22 = vld [vmem:[#allocation3 + $0x40] sm:$0xff]  ;;  %v54_v23 = vld [vmem:[#allocation3 + $0x50] sm:$0xff]  ;;  %v57_v24 = vld [vmem:[#allocation3 + $0x68] sm:$0xff] }
  0x1a   :  { %280 = vmatpush1.msra.mxu0 %v48_v9  ;;  %369 = vmatpush1.msra.mxu1 %v50_v10  ;;  %v59_v25 = vld [vmem:[#allocation3 + $0x78] sm:$0xff]  ;;  %v1077_v26 = vld [vmem:[%s5216_s4 + $0x10] sm:$0xff]  ;;  %v56_v28 = vld [vmem:[#allocation3 + $0x60] sm:$0xff] }
  0x1b   :  { %3936 = vmatmul.mubr.msk.f32.gmra.mrb[2].mxu0 %vm88_vm0, %v4437_v11  ;;  %3940 = vmatmul.mubr.msk.f32.gmra.mrb[2].mxu1 %vm88_vm0, %v4437_v11  ;;  %v1078_v27 = vld [vmem:[%s5216_s4 + $0x18] sm:$0xff]  ;;  %v58_v29 = vld [vmem:[#allocation3 + $0x70] sm:$0xff]  ;;  %v61_v30 = vld [vmem:[#allocation3 + $0x88] sm:$0xff] }
  0x1c   :  { %177 = vmatprep.mubr.f32.mxu0 %v4365_v0  ;;  %266 = vmatprep.mubr.f32.mxu1 %v4365_v0  ;;  %v63_v31 = vld [vmem:[#allocation3 + $0x98] sm:$0xff]  ;;  %v60_v32 = vld [vmem:[#allocation3 + $0x80] sm:$0xff]  ;;  %v62_v33 = vld [vmem:[#allocation3 + $0x90] sm:$0xff] }
  0x1d   :  { %457 = vmatprep.subr.mxu0 %v53_v12  ;;  %546 = vmatprep.subr.mxu1 %v55_v13 }
  0x1e   :  { %70 = vperm.xlu0 %4310, %v64_v15   ;;  %80 = vperm.xlu1 %4311, %v66_v16  }
  0x1f   :  { %3937 = vmatmul.mubr.msk.f32.gmra.mrb[4].mxu0 %vm88_vm0, %v4448_v14  ;;  %3941 = vmatmul.mubr.msk.f32.gmra.mrb[4].mxu1 %vm88_vm0, %v4448_v14 }
  0x20   :  { %183 = vmatprep.mubr.f32.mxu0 %v4365_v0  ;;  %272 = vmatprep.mubr.f32.mxu1 %v4365_v0 }
  0x22   :  { %75 = vperm.xlu0 %4310, %v65_v17   ;;  %85 = vperm.xlu1 %4311, %v67_v18  }
  0x23   :  { %3938 = vmatmul.mubr.msk.f32.gmra.mrb[6].mxu0 %vm88_vm0, %v4471_v19  ;;  %3942 = vmatmul.mubr.msk.f32.gmra.mrb[6].mxu1 %vm88_vm0, %v4471_v19 }
  0x24   :  { %343 = vmatprep.mubr.f32.mxu0 %v4365_v0  ;;  %432 = vmatprep.mubr.f32.mxu1 %v4365_v0 }
  0x26   :  { %1081 = vperm.xlu0 %4310, %v1075_v20   ;;  %1086 = vperm.xlu1 %4311, %v1076_v21  }
  0x27   :  { %3943 = vmatmul.mubr.msk.f32.vlgmr.msra.gmra.mrb[8].mxu0 %vm88_vm0, %v4426_v6  ;;  %3947 = vmatmul.mubr.msk.f32.vlgmr.msra.gmra.mrb[8].mxu1 %vm88_vm0, %v4426_v6 }
  0x28   :  { %349 = vmatprep.mubr.f32.mxu0 %v4365_v0  ;;  %438 = vmatprep.mubr.f32.mxu1 %v4365_v0 }
  0x29   :  { %458 = vmatpush1.msra.mxu0 %v52_v22  ;;  %547 = vmatpush1.msra.mxu1 %v54_v23 }
  0x2a   :  { %635 = vmatprep.subr.mxu0 %v57_v24  ;;  %724 = vmatprep.subr.mxu1 %v59_v25 }
  0x2b   :  { %3944 = vmatmul.mubr.msk.f32.gmra.mrb[10].mxu0 %vm88_vm0, %v4437_v11  ;;  %3948 = vmatmul.mubr.msk.f32.gmra.mrb[10].mxu1 %vm88_vm0, %v4437_v11 }
  0x2c   :  { %355 = vmatprep.mubr.f32.mxu0 %v4365_v0  ;;  %444 = vmatprep.mubr.f32.mxu1 %v4365_v0 }
  0x2d   :  { %1091 = vperm.xlu0 %4310, %v1077_v26   ;;  %1096 = vperm.xlu1 %4311, %v1078_v27  }
  0x2f   :  { %3945 = vmatmul.mubr.msk.f32.gmra.mrb[12].mxu0 %vm88_vm0, %v4448_v14  ;;  %3949 = vmatmul.mubr.msk.f32.gmra.mrb[12].mxu1 %vm88_vm0, %v4448_v14 }
  0x30   :  { %361 = vmatprep.mubr.f32.mxu0 %v4365_v0  ;;  %450 = vmatprep.mubr.f32.mxu1 %v4365_v0 }
  0x33   :  { %3946 = vmatmul.mubr.msk.f32.gmra.mrb[14].mxu0 %vm88_vm0, %v4471_v19  ;;  %3950 = vmatmul.mubr.msk.f32.gmra.mrb[14].mxu1 %vm88_vm0, %v4471_v19 }
  0x34   :  { %521 = vmatprep.mubr.f32.mxu0 %v4365_v0  ;;  %610 = vmatprep.mubr.f32.mxu1 %v4365_v0 }
  0x37   :  { %3951 = vmatmul.mubr.msk.f32.vlgmr.msra.gmra.mrb[16].mxu0 %vm88_vm0, %v4426_v6  ;;  %3955 = vmatmul.mubr.msk.f32.vlgmr.msra.gmra.mrb[16].mxu1 %vm88_vm0, %v4426_v6 }
  0x38   :  { %527 = vmatprep.mubr.f32.mxu0 %v4365_v0  ;;  %616 = vmatprep.mubr.f32.mxu1 %v4365_v0 }
  0x39   :  { %636 = vmatpush1.msra.mxu0 %v56_v28  ;;  %725 = vmatpush1.msra.mxu1 %v58_v29 }
  0x3a   :  { %813 = vmatprep.subr.mxu0 %v61_v30  ;;  %902 = vmatprep.subr.mxu1 %v63_v31 }
  0x3b   :  { %3952 = vmatmul.mubr.msk.f32.gmra.mrb[18].mxu0 %vm88_vm0, %v4437_v11  ;;  %3956 = vmatmul.mubr.msk.f32.gmra.mrb[18].mxu1 %vm88_vm0, %v4437_v11 }
  0x3c   :  { %533 = vmatprep.mubr.f32.mxu0 %v4365_v0  ;;  %622 = vmatprep.mubr.f32.mxu1 %v4365_v0 }
  0x3f   :  { %3953 = vmatmul.mubr.msk.f32.gmra.mrb[20].mxu0 %vm88_vm0, %v4448_v14  ;;  %3957 = vmatmul.mubr.msk.f32.gmra.mrb[20].mxu1 %vm88_vm0, %v4448_v14 }
  0x40   :  { %539 = vmatprep.mubr.f32.mxu0 %v4365_v0  ;;  %628 = vmatprep.mubr.f32.mxu1 %v4365_v0 }
  0x43   :  { %3954 = vmatmul.mubr.msk.f32.gmra.mrb[22].mxu0 %vm88_vm0, %v4471_v19  ;;  %3958 = vmatmul.mubr.msk.f32.gmra.mrb[22].mxu1 %vm88_vm0, %v4471_v19 }
  0x44   :  { %699 = vmatprep.mubr.f32.mxu0 %v4365_v0  ;;  %788 = vmatprep.mubr.f32.mxu1 %v4365_v0 }
  0x47   :  { %3959 = vmatmul.mubr.msk.f32.vlgmr.msra.gmra.mrb[24].mxu0 %vm88_vm0, %v4426_v6  ;;  %3963 = vmatmul.mubr.msk.f32.vlgmr.msra.gmra.mrb[24].mxu1 %vm88_vm0, %v4426_v6 }
  0x48   :  { %705 = vmatprep.mubr.f32.mxu0 %v4365_v0  ;;  %794 = vmatprep.mubr.f32.mxu1 %v4365_v0 }
  0x49   :  { %814 = vmatpush1.msra.mxu0 %v60_v32  ;;  %903 = vmatpush1.msra.mxu1 %v62_v33 }
  0x4b   :  { %3960 = vmatmul.mubr.msk.f32.gmra.mrb[26].mxu0 %vm88_vm0, %v4437_v11  ;;  %3964 = vmatmul.mubr.msk.f32.gmra.mrb[26].mxu1 %vm88_vm0, %v4437_v11 }
  0x4c   :  { %711 = vmatprep.mubr.f32.mxu0 %v4365_v0  ;;  %800 = vmatprep.mubr.f32.mxu1 %v4365_v0 }
  0x4f   :  { %3961 = vmatmul.mubr.msk.f32.gmra.mrb[28].mxu0 %vm88_vm0, %v4448_v14  ;;  %3965 = vmatmul.mubr.msk.f32.gmra.mrb[28].mxu1 %vm88_vm0, %v4448_v14 }
  0x50   :  { %717 = vmatprep.mubr.f32.mxu0 %v4365_v0  ;;  %806 = vmatprep.mubr.f32.mxu1 %v4365_v0 }
  0x53   :  { %3962 = vmatmul.mubr.msk.f32.gmra.mrb[30].mxu0 %vm88_vm0, %v4471_v19  ;;  %3966 = vmatmul.mubr.msk.f32.gmra.mrb[30].mxu1 %vm88_vm0, %v4471_v19 }
  0x54   :  { %877 = vmatprep.mubr.f32.mxu0 %v4365_v0  ;;  %966 = vmatprep.mubr.f32.mxu1 %v4365_v0 }
  0x57   :  { %3967 = vmatmul.mubr.msk.f32.vlgmr.msra.gmra.mrb[32].mxu0 %vm88_vm0, %v4426_v6  ;;  %3971 = vmatmul.mubr.msk.f32.vlgmr.msra.gmra.mrb[32].mxu1 %vm88_vm0, %v4426_v6 }
  0x58   :  { %883 = vmatprep.mubr.f32.mxu0 %v4365_v0  ;;  %972 = vmatprep.mubr.f32.mxu1 %v4365_v0 }
  0x5b   :  { %3968 = vmatmul.mubr.msk.f32.gmra.mrb[34].mxu0 %vm88_vm0, %v4437_v11  ;;  %3972 = vmatmul.mubr.msk.f32.gmra.mrb[34].mxu1 %vm88_vm0, %v4437_v11 }
  0x5c   :  { %889 = vmatprep.mubr.f32.mxu0 %v4365_v0  ;;  %978 = vmatprep.mubr.f32.mxu1 %v4365_v0 }
  0x5f   :  { %3969 = vmatmul.mubr.msk.f32.gmra.mrb[36].mxu0 %vm88_vm0, %v4448_v14  ;;  %3973 = vmatmul.mubr.msk.f32.gmra.mrb[36].mxu1 %vm88_vm0, %v4448_v14 }
  0x60   :  { %895 = vmatprep.mubr.f32.mxu0 %v4365_v0  ;;  %984 = vmatprep.mubr.f32.mxu1 %v4365_v0 }
  0x63   :  { %3970 = vmatmul.mubr.msk.f32.gmra.mrb[38].mxu0 %vm88_vm0, %v4471_v19  ;;  %3974 = vmatmul.mubr.msk.f32.gmra.mrb[38].mxu1 %vm88_vm0, %v4471_v19 }
  0x64   :  { %1176 = vmatprep.mubr.f32.mxu0 %v4365_v0  ;;  %1265 = vmatprep.mubr.f32.mxu1 %v4365_v0 }
  0x9d   :  { %v4587_v34 = vpop.permute.xlu0 %70  ;;  %v4591_v40 = vpop.permute.xlu1 %80 }
  0xa1   :  { %v4589_v39 = vpop.permute.xlu0 %75  ;;  %v4601_v6 = vpop.permute.xlu1 %85 }
  0xea   :  { %v167_v35 = vpop.f32.mrb[0].mxu0  ;;  %v256_v36 = vpop.f32.mrb[0].mxu1 }
  0xeb   :  { %v169_v37 = vpop.f32.mrb[1].mxu0  ;;  %v258_v38 = vpop.f32.mrb[1].mxu1  ;;  %v168_v41 = vadd.f32 %v167_v35, %v4587_v34  ;;  %v257_v42 = vadd.f32 %v256_v36, %v4587_v34 }
  0xec   :  { %v170_v43 = vadd.f32 %v169_v37, %v4587_v34  ;;  %v259_v44 = vadd.f32 %v258_v38, %v4587_v34 }
  0xed   :  { %v991_v53 = vmax.f32 %v168_v41, 0.0  ;;  %v993_v54 = vmax.f32 %v257_v42, 0.0 }
  0xee   :  { %v173_v45 = vpop.f32.mrb[2].mxu0  ;;  %v262_v46 = vpop.f32.mrb[2].mxu1  ;;  %v992_v57 = vmax.f32 %v170_v43, 0.0  ;;  %v994_v58 = vmax.f32 %v259_v44, 0.0 }
  0xef   :  { %v174_v47 = vadd.f32 %v173_v45, %v4589_v39  ;;  %v263_v48 = vadd.f32 %v262_v46, %v4589_v39  ;;  %v175_v49 = vpop.f32.mrb[3].mxu0  ;;  %v264_v50 = vpop.f32.mrb[3].mxu1 }
  0xf0   :  { %v176_v51 = vadd.f32 %v175_v49, %v4589_v39  ;;  %v265_v52 = vadd.f32 %v264_v50, %v4589_v39 }
  0xf1   :  { %v1011_v55 = vmax.f32 %v174_v47, 0.0  ;;  %v1013_v56 = vmax.f32 %v263_v48, 0.0  ;;  %v4620_v48 = vld [vmem:[%s5215_s3] sm:$0xff] }
  0xf2   :  { %v1012_v59 = vmax.f32 %v176_v51, 0.0  ;;  %v1014_v60 = vmax.f32 %v265_v52, 0.0  ;;  %v179_v61 = vpop.f32.mrb[4].mxu0  ;;  %v268_v62 = vpop.f32.mrb[4].mxu1 }
  0xf3   :  { %v4067_v63 = vpack.c.bf16 %v1011_v55, %v991_v53  ;;  %v4075_v1 = vpack.c.bf16 %v1013_v56, %v993_v54  ;;  %v181_v2 = vpop.f32.mrb[5].mxu0  ;;  %v270_v3 = vpop.f32.mrb[5].mxu1  ;;  %v180_v7 = vadd.f32 %v179_v61, %v4591_v40  ;;  %v269_v8 = vadd.f32 %v268_v62, %v4591_v40 }
  0xf4   :  { %v4065_v4 = vpack.c.bf16 %v1012_v59, %v992_v57  ;;  %v4073_v5 = vpack.c.bf16 %v1014_v60, %v994_v58  ;;  %v182_v9 = vadd.f32 %v181_v2, %v4591_v40  ;;  %v271_v10 = vadd.f32 %v270_v3, %v4591_v40  ;;  %v4632_v2 = vld [vmem:[%s5215_s3 + $0x8] sm:$0xff] }
  0xf5   :  { %v1031_v19 = vmax.f32 %v180_v7, 0.0  ;;  %v1033_v20 = vmax.f32 %v269_v8, 0.0 }
  0xf6   :  { %v185_v11 = vpop.f32.mrb[6].mxu0  ;;  %v274_v12 = vpop.f32.mrb[6].mxu1  ;;  %4066 = vmatprep.subr.bf16.mxu0 %v4065_v4  ;;  %4074 = vmatprep.subr.bf16.mxu1 %v4073_v5  ;;  %v1032_v23 = vmax.f32 %v182_v9, 0.0  ;;  %v1034_v24 = vmax.f32 %v271_v10, 0.0 }
  0xf7   :  { %v186_v13 = vadd.f32 %v185_v11, %v4601_v6  ;;  %v275_v14 = vadd.f32 %v274_v12, %v4601_v6  ;;  %v187_v15 = vpop.f32.mrb[7].mxu0  ;;  %v276_v16 = vpop.f32.mrb[7].mxu1  ;;  %4068 = vmatpush1.bf16.msra.mxu0 %v4067_v63  ;;  %4076 = vmatpush1.bf16.msra.mxu1 %v4075_v1 }
  0xf8   :  { %v188_v17 = vadd.f32 %v187_v15, %v4601_v6  ;;  %v277_v18 = vadd.f32 %v276_v16, %v4601_v6  ;;  %v4648_v16 = vld [vmem:[%s5215_s3 + $0x10] sm:$0xff] }
  0xf9   :  { %v1051_v21 = vmax.f32 %v186_v13, 0.0  ;;  %v1053_v22 = vmax.f32 %v275_v14, 0.0 }
  0xfa   :  { %v1052_v25 = vmax.f32 %v188_v17, 0.0  ;;  %v1054_v26 = vmax.f32 %v277_v18, 0.0  ;;  %v345_v27 = vpop.f32.mrb[8].mxu0  ;;  %v434_v28 = vpop.f32.mrb[8].mxu1 }
  0xfb   :  { %v4071_v29 = vpack.c.bf16 %v1051_v21, %v1031_v19  ;;  %v4079_v30 = vpack.c.bf16 %v1053_v22, %v1033_v20  ;;  %v347_v31 = vpop.f32.mrb[9].mxu0  ;;  %v436_v32 = vpop.f32.mrb[9].mxu1  ;;  %v346_v36 = vadd.f32 %v345_v27, %v4587_v34  ;;  %v435_v37 = vadd.f32 %v434_v28, %v4587_v34 }
  0xfc   :  { %v4069_v33 = vpack.c.bf16 %v1052_v25, %v1032_v23  ;;  %v4077_v35 = vpack.c.bf16 %v1054_v26, %v1034_v24  ;;  %v348_v38 = vadd.f32 %v347_v31, %v4587_v34  ;;  %v437_v41 = vadd.f32 %v436_v32, %v4587_v34 }
  0xfd   :  { %v995_v51 = vmax.f32 %v346_v36, 0.0  ;;  %v997_v52 = vmax.f32 %v435_v37, 0.0 }
  0xfe   :  { %v351_v42 = vpop.f32.mrb[10].mxu0  ;;  %v440_v43 = vpop.f32.mrb[10].mxu1  ;;  %4070 = vmatprep.subr.bf16.mxu0 %v4069_v33  ;;  %4078 = vmatprep.subr.bf16.mxu1 %v4077_v35  ;;  %v996_v55 = vmax.f32 %v348_v38, 0.0  ;;  %v998_v56 = vmax.f32 %v437_v41, 0.0  ;;  %v4662_v33 = vld [vmem:[%s5215_s3 + $0x18] sm:$0xff] }
  0xff   :  { %v352_v44 = vadd.f32 %v351_v42, %v4589_v39  ;;  %v441_v45 = vadd.f32 %v440_v43, %v4589_v39  ;;  %v353_v46 = vpop.f32.mrb[11].mxu0  ;;  %v442_v47 = vpop.f32.mrb[11].mxu1  ;;  %4072 = vmatpush1.bf16.msra.mxu0 %v4071_v29  ;;  %4080 = vmatpush1.bf16.msra.mxu1 %v4079_v30 }
 0x100   :  { %v354_v49 = vadd.f32 %v353_v46, %v4589_v39  ;;  %v443_v50 = vadd.f32 %v442_v47, %v4589_v39 }
 0x101   :  { %v1015_v53 = vmax.f32 %v352_v44, 0.0  ;;  %v1017_v54 = vmax.f32 %v441_v45, 0.0 }
 0x102   :  { %v1016_v57 = vmax.f32 %v354_v49, 0.0  ;;  %v1018_v58 = vmax.f32 %v443_v50, 0.0  ;;  %v357_v59 = vpop.f32.mrb[12].mxu0  ;;  %v446_v60 = vpop.f32.mrb[12].mxu1  ;;  %3975 = vmatmul.mubr.msk.f32.vlgmr.msra.gmra.mrb[40].mxu0 %vm1099_vm1, %v4620_v48  ;;  %3979 = vmatmul.mubr.msk.f32.vlgmr.msra.gmra.mrb[40].mxu1 %vm1099_vm1, %v4620_v48 }
 0x103   :  { %v4083_v61 = vpack.c.bf16 %v1015_v53, %v995_v51  ;;  %v4091_v62 = vpack.c.bf16 %v1017_v54, %v997_v52  ;;  %v359_v63 = vpop.f32.mrb[13].mxu0  ;;  %v448_v1 = vpop.f32.mrb[13].mxu1  ;;  %1182 = vmatprep.mubr.f32.mxu0 %v4365_v0  ;;  %1271 = vmatprep.mubr.f32.mxu1 %v4365_v0  ;;  %v358_v5 = vadd.f32 %v357_v59, %v4591_v40 }
 0x104   :  { %v4081_v3 = vpack.c.bf16 %v1016_v57, %v996_v55  ;;  %v4089_v4 = vpack.c.bf16 %v1018_v58, %v998_v56  ;;  %v447_v7 = vadd.f32 %v446_v60, %v4591_v40  ;;  %v360_v8 = vadd.f32 %v359_v63, %v4591_v40 }
 0x105   :  { %v449_v9 = vadd.f32 %v448_v1, %v4591_v40  ;;  %v1035_v19 = vmax.f32 %v358_v5, 0.0 }
 0x106   :  { %v363_v10 = vpop.f32.mrb[14].mxu0  ;;  %v452_v11 = vpop.f32.mrb[14].mxu1  ;;  %3976 = vmatmul.mubr.msk.f32.gmra.mrb[42].mxu0 %vm1099_vm1, %v4632_v2  ;;  %3980 = vmatmul.mubr.msk.f32.gmra.mrb[42].mxu1 %vm1099_vm1, %v4632_v2  ;;  %v1037_v20 = vmax.f32 %v447_v7, 0.0  ;;  %v1036_v23 = vmax.f32 %v360_v8, 0.0 }
 0x107   :  { %v364_v12 = vadd.f32 %v363_v10, %v4601_v6  ;;  %v453_v13 = vadd.f32 %v452_v11, %v4601_v6  ;;  %4082 = vmatprep.subr.bf16.mxu0 %v4081_v3  ;;  %4090 = vmatprep.subr.bf16.mxu1 %v4089_v4  ;;  %v365_v14 = vpop.f32.mrb[15].mxu0  ;;  %v454_v15 = vpop.f32.mrb[15].mxu1  ;;  %v1038_v24 = vmax.f32 %v449_v9, 0.0 }
 0x108   :  { %v366_v17 = vadd.f32 %v365_v14, %v4601_v6  ;;  %v455_v18 = vadd.f32 %v454_v15, %v4601_v6  ;;  %4084 = vmatpush1.bf16.msra.mxu0 %v4083_v61  ;;  %4092 = vmatpush1.bf16.msra.mxu1 %v4091_v62 }
 0x109   :  { %v1055_v21 = vmax.f32 %v364_v12, 0.0  ;;  %v1057_v22 = vmax.f32 %v453_v13, 0.0  ;;  %1188 = vmatprep.mubr.f32.mxu0 %v4365_v0  ;;  %1277 = vmatprep.mubr.f32.mxu1 %v4365_v0 }
 0x10a   :  { %v1056_v25 = vmax.f32 %v366_v17, 0.0  ;;  %v1058_v26 = vmax.f32 %v455_v18, 0.0  ;;  %v523_v27 = vpop.f32.mrb[16].mxu0  ;;  %v612_v28 = vpop.f32.mrb[16].mxu1  ;;  %3977 = vmatmul.mubr.msk.f32.gmra.mrb[44].mxu0 %vm1099_vm1, %v4648_v16  ;;  %3981 = vmatmul.mubr.msk.f32.gmra.mrb[44].mxu1 %vm1099_vm1, %v4648_v16 }
 0x10b   :  { %v4087_v29 = vpack.c.bf16 %v1055_v21, %v1035_v19  ;;  %v4095_v30 = vpack.c.bf16 %v1057_v22, %v1037_v20  ;;  %v525_v31 = vpop.f32.mrb[17].mxu0  ;;  %v614_v32 = vpop.f32.mrb[17].mxu1  ;;  %1194 = vmatprep.mubr.f32.mxu0 %v4365_v0  ;;  %1283 = vmatprep.mubr.f32.mxu1 %v4365_v0  ;;  %v524_v37 = vadd.f32 %v523_v27, %v4587_v34 }
 0x10c   :  { %v4085_v35 = vpack.c.bf16 %v1056_v25, %v1036_v23  ;;  %v4093_v36 = vpack.c.bf16 %v1058_v26, %v1038_v24  ;;  %v613_v38 = vadd.f32 %v612_v28, %v4587_v34  ;;  %v526_v41 = vadd.f32 %v525_v31, %v4587_v34 }
 0x10d   :  { %v615_v42 = vadd.f32 %v614_v32, %v4587_v34  ;;  %v999_v52 = vmax.f32 %v524_v37, 0.0 }
 0x10e   :  { %v529_v43 = vpop.f32.mrb[18].mxu0  ;;  %v618_v44 = vpop.f32.mrb[18].mxu1  ;;  %3978 = vmatmul.mubr.msk.f32.gmra.mrb[46].mxu0 %vm1099_vm1, %v4662_v33  ;;  %3982 = vmatmul.mubr.msk.f32.gmra.mrb[46].mxu1 %vm1099_vm1, %v4662_v33  ;;  %v1001_v53 = vmax.f32 %v613_v38, 0.0  ;;  %v1000_v56 = vmax.f32 %v526_v41, 0.0 }
 0x10f   :  { %v530_v45 = vadd.f32 %v529_v43, %v4589_v39  ;;  %v619_v46 = vadd.f32 %v618_v44, %v4589_v39  ;;  %4086 = vmatprep.subr.bf16.mxu0 %v4085_v35  ;;  %4094 = vmatprep.subr.bf16.mxu1 %v4093_v36  ;;  %v531_v47 = vpop.f32.mrb[19].mxu0  ;;  %v620_v49 = vpop.f32.mrb[19].mxu1  ;;  %v1002_v57 = vmax.f32 %v615_v42, 0.0 }
 0x110   :  { %v532_v50 = vadd.f32 %v531_v47, %v4589_v39  ;;  %v621_v51 = vadd.f32 %v620_v49, %v4589_v39  ;;  %4088 = vmatpush1.bf16.msra.mxu0 %v4087_v29  ;;  %4096 = vmatpush1.bf16.msra.mxu1 %v4095_v30 }
 0x111   :  { %v1019_v54 = vmax.f32 %v530_v45, 0.0  ;;  %v1021_v55 = vmax.f32 %v619_v46, 0.0  ;;  %1354 = vmatprep.mubr.f32.mxu0 %v4365_v0  ;;  %1443 = vmatprep.mubr.f32.mxu1 %v4365_v0 }
 0x112   :  { %v1020_v58 = vmax.f32 %v532_v50, 0.0  ;;  %v1022_v59 = vmax.f32 %v621_v51, 0.0  ;;  %v535_v60 = vpop.f32.mrb[20].mxu0  ;;  %v624_v61 = vpop.f32.mrb[20].mxu1 }
 0x113   :  { %v4099_v62 = vpack.c.bf16 %v1019_v54, %v999_v52  ;;  %v4107_v63 = vpack.c.bf16 %v1021_v55, %v1001_v53  ;;  %3983 = vmatmul.mubr.msk.f32.vlgmr.msra.gmra.mrb[48].mxu0 %vm1099_vm1, %v4620_v48  ;;  %v537_v1 = vpop.f32.mrb[21].mxu0  ;;  %v626_v3 = vpop.f32.mrb[21].mxu1  ;;  %3987 = vmatmul.mubr.msk.f32.vlgmr.msra.gmra.mrb[48].mxu1 %vm1099_vm1, %v4620_v48  ;;  %v536_v7 = vadd.f32 %v535_v60, %v4591_v40 }
 0x114   :  { %v4097_v4 = vpack.c.bf16 %v1020_v58, %v1000_v56  ;;  %v4105_v5 = vpack.c.bf16 %v1022_v59, %v1002_v57  ;;  %v625_v8 = vadd.f32 %v624_v61, %v4591_v40  ;;  %1360 = vmatprep.mubr.f32.mxu0 %v4365_v0  ;;  %1449 = vmatprep.mubr.f32.mxu1 %v4365_v0 }
 0x115   :  { %v538_v9 = vadd.f32 %v537_v1, %v4591_v40  ;;  %v627_v10 = vadd.f32 %v626_v3, %v4591_v40  ;;  %v1039_v20 = vmax.f32 %v536_v7, 0.0 }
 0x116   :  { %v541_v11 = vpop.f32.mrb[22].mxu0  ;;  %v630_v12 = vpop.f32.mrb[22].mxu1  ;;  %4098 = vmatprep.subr.bf16.mxu0 %v4097_v4  ;;  %4106 = vmatprep.subr.bf16.mxu1 %v4105_v5  ;;  %v1041_v21 = vmax.f32 %v625_v8, 0.0 }
 0x117   :  { %v542_v13 = vadd.f32 %v541_v11, %v4601_v6  ;;  %v631_v14 = vadd.f32 %v630_v12, %v4601_v6  ;;  %3984 = vmatmul.mubr.msk.f32.gmra.mrb[50].mxu0 %vm1099_vm1, %v4632_v2  ;;  %v543_v15 = vpop.f32.mrb[23].mxu0  ;;  %v632_v17 = vpop.f32.mrb[23].mxu1  ;;  %4108 = vmatpush1.bf16.msra.mxu1 %v4107_v63  ;;  %v1040_v24 = vmax.f32 %v538_v9, 0.0  ;;  %v1042_v25 = vmax.f32 %v627_v10, 0.0 }
 0x118   :  { %3988 = vmatmul.mubr.msk.f32.gmra.mrb[50].mxu1 %vm1099_vm1, %v4632_v2  ;;  %v544_v18 = vadd.f32 %v543_v15, %v4601_v6  ;;  %v633_v19 = vadd.f32 %v632_v17, %v4601_v6  ;;  %4100 = vmatpush1.bf16.msra.mxu0 %v4099_v62 }
 0x119   :  { %v1059_v22 = vmax.f32 %v542_v13, 0.0  ;;  %v1061_v23 = vmax.f32 %v631_v14, 0.0  ;;  %1366 = vmatprep.mubr.f32.mxu0 %v4365_v0  ;;  %1455 = vmatprep.mubr.f32.mxu1 %v4365_v0 }
 0x11a   :  { %v1060_v26 = vmax.f32 %v544_v18, 0.0  ;;  %v1062_v27 = vmax.f32 %v633_v19, 0.0  ;;  %v701_v28 = vpop.f32.mrb[24].mxu0  ;;  %v790_v29 = vpop.f32.mrb[24].mxu1 }
 0x11b   :  { %v4103_v30 = vpack.c.bf16 %v1059_v22, %v1039_v20  ;;  %v4111_v31 = vpack.c.bf16 %v1061_v23, %v1041_v21  ;;  %3985 = vmatmul.mubr.msk.f32.gmra.mrb[52].mxu0 %vm1099_vm1, %v4648_v16  ;;  %v703_v32 = vpop.f32.mrb[25].mxu0  ;;  %v792_v35 = vpop.f32.mrb[25].mxu1  ;;  %v702_v38 = vadd.f32 %v701_v28, %v4587_v34  ;;  %v791_v41 = vadd.f32 %v790_v29, %v4587_v34 }
 0x11c   :  { %v4101_v36 = vpack.c.bf16 %v1060_v26, %v1040_v24  ;;  %v4109_v37 = vpack.c.bf16 %v1062_v27, %v1042_v25  ;;  %3989 = vmatmul.mubr.msk.f32.gmra.mrb[52].mxu1 %vm1099_vm1, %v4648_v16  ;;  %1372 = vmatprep.mubr.f32.mxu0 %v4365_v0  ;;  %v704_v42 = vadd.f32 %v703_v32, %v4587_v34 }
 0x11d   :  { %1461 = vmatprep.mubr.f32.mxu1 %v4365_v0  ;;  %v793_v43 = vadd.f32 %v792_v35, %v4587_v34  ;;  %v1003_v53 = vmax.f32 %v702_v38, 0.0  ;;  %v1005_v54 = vmax.f32 %v791_v41, 0.0 }
 0x11e   :  { %v707_v44 = vpop.f32.mrb[26].mxu0  ;;  %v796_v45 = vpop.f32.mrb[26].mxu1  ;;  %4102 = vmatprep.subr.bf16.mxu0 %v4101_v36  ;;  %4110 = vmatprep.subr.bf16.mxu1 %v4109_v37  ;;  %v1004_v57 = vmax.f32 %v704_v42, 0.0 }
 0x11f   :  { %v708_v46 = vadd.f32 %v707_v44, %v4589_v39  ;;  %v797_v47 = vadd.f32 %v796_v45, %v4589_v39  ;;  %3986 = vmatmul.mubr.msk.f32.gmra.mrb[54].mxu0 %vm1099_vm1, %v4662_v33  ;;  %v709_v49 = vpop.f32.mrb[27].mxu0  ;;  %v798_v50 = vpop.f32.mrb[27].mxu1  ;;  %4112 = vmatpush1.bf16.msra.mxu1 %v4111_v31  ;;  %v1006_v58 = vmax.f32 %v793_v43, 0.0 }
 0x120   :  { %3990 = vmatmul.mubr.msk.f32.gmra.mrb[54].mxu1 %vm1099_vm1, %v4662_v33  ;;  %v710_v51 = vadd.f32 %v709_v49, %v4589_v39  ;;  %v799_v52 = vadd.f32 %v798_v50, %v4589_v39  ;;  %4104 = vmatpush1.bf16.msra.mxu0 %v4103_v30 }
 0x121   :  { %v1023_v55 = vmax.f32 %v708_v46, 0.0  ;;  %v1025_v56 = vmax.f32 %v797_v47, 0.0  ;;  %1532 = vmatprep.mubr.f32.mxu0 %v4365_v0  ;;  %1621 = vmatprep.mubr.f32.mxu1 %v4365_v0 }
 0x122   :  { %v1024_v59 = vmax.f32 %v710_v51, 0.0  ;;  %v1026_v60 = vmax.f32 %v799_v52, 0.0  ;;  %v713_v61 = vpop.f32.mrb[28].mxu0  ;;  %v802_v62 = vpop.f32.mrb[28].mxu1 }
 0x123   :  { %v4115_v63 = vpack.c.bf16 %v1023_v55, %v1003_v53  ;;  %v4123_v1 = vpack.c.bf16 %v1025_v56, %v1005_v54  ;;  %3991 = vmatmul.mubr.msk.f32.vlgmr.msra.gmra.mrb[56].mxu0 %vm1099_vm1, %v4620_v48  ;;  %v715_v3 = vpop.f32.mrb[29].mxu0  ;;  %v804_v4 = vpop.f32.mrb[29].mxu1  ;;  %v714_v8 = vadd.f32 %v713_v61, %v4591_v40  ;;  %v803_v9 = vadd.f32 %v802_v62, %v4591_v40 }
 0x124   :  { %v4113_v5 = vpack.c.bf16 %v1024_v59, %v1004_v57  ;;  %v4121_v7 = vpack.c.bf16 %v1026_v60, %v1006_v58  ;;  %3995 = vmatmul.mubr.msk.f32.vlgmr.msra.gmra.mrb[56].mxu1 %vm1099_vm1, %v4620_v48  ;;  %1538 = vmatprep.mubr.f32.mxu0 %v4365_v0  ;;  %v716_v10 = vadd.f32 %v715_v3, %v4591_v40 }
 0x125   :  { %1627 = vmatprep.mubr.f32.mxu1 %v4365_v0  ;;  %v805_v11 = vadd.f32 %v804_v4, %v4591_v40  ;;  %v1043_v21 = vmax.f32 %v714_v8, 0.0  ;;  %v1045_v22 = vmax.f32 %v803_v9, 0.0 }
 0x126   :  { %v719_v12 = vpop.f32.mrb[30].mxu0  ;;  %v808_v13 = vpop.f32.mrb[30].mxu1  ;;  %4114 = vmatprep.subr.bf16.mxu0 %v4113_v5  ;;  %4122 = vmatprep.subr.bf16.mxu1 %v4121_v7  ;;  %v1044_v25 = vmax.f32 %v716_v10, 0.0 }
 0x127   :  { %v720_v14 = vadd.f32 %v719_v12, %v4601_v6  ;;  %v809_v15 = vadd.f32 %v808_v13, %v4601_v6  ;;  %3992 = vmatmul.mubr.msk.f32.gmra.mrb[58].mxu0 %vm1099_vm1, %v4632_v2  ;;  %v721_v17 = vpop.f32.mrb[31].mxu0  ;;  %v810_v18 = vpop.f32.mrb[31].mxu1  ;;  %4124 = vmatpush1.bf16.msra.mxu1 %v4123_v1  ;;  %v1046_v26 = vmax.f32 %v805_v11, 0.0 }
 0x128   :  { %3996 = vmatmul.mubr.msk.f32.gmra.mrb[58].mxu1 %vm1099_vm1, %v4632_v2  ;;  %v722_v19 = vadd.f32 %v721_v17, %v4601_v6  ;;  %v811_v20 = vadd.f32 %v810_v18, %v4601_v6  ;;  %4116 = vmatpush1.bf16.msra.mxu0 %v4115_v63 }
 0x129   :  { %v1063_v23 = vmax.f32 %v720_v14, 0.0  ;;  %v1065_v24 = vmax.f32 %v809_v15, 0.0  ;;  %1544 = vmatprep.mubr.f32.mxu0 %v4365_v0  ;;  %1633 = vmatprep.mubr.f32.mxu1 %v4365_v0 }
 0x12a   :  { %v1064_v27 = vmax.f32 %v722_v19, 0.0  ;;  %v1066_v28 = vmax.f32 %v811_v20, 0.0  ;;  %v879_v29 = vpop.f32.mrb[32].mxu0  ;;  %v968_v30 = vpop.f32.mrb[32].mxu1 }
 0x12b   :  { %v4119_v31 = vpack.c.bf16 %v1063_v23, %v1043_v21  ;;  %v4127_v32 = vpack.c.bf16 %v1065_v24, %v1045_v22  ;;  %3993 = vmatmul.mubr.msk.f32.gmra.mrb[60].mxu0 %vm1099_vm1, %v4648_v16  ;;  %v881_v35 = vpop.f32.mrb[33].mxu0  ;;  %v970_v36 = vpop.f32.mrb[33].mxu1  ;;  %v880_v41 = vadd.f32 %v879_v29, %v4587_v34  ;;  %v969_v42 = vadd.f32 %v968_v30, %v4587_v34 }
 0x12c   :  { %v4117_v37 = vpack.c.bf16 %v1064_v27, %v1044_v25  ;;  %v4125_v38 = vpack.c.bf16 %v1066_v28, %v1046_v26  ;;  %3997 = vmatmul.mubr.msk.f32.gmra.mrb[60].mxu1 %vm1099_vm1, %v4648_v16  ;;  %1550 = vmatprep.mubr.f32.mxu0 %v4365_v0  ;;  %v882_v43 = vadd.f32 %v881_v35, %v4587_v34 }
 0x12d   :  { %1639 = vmatprep.mubr.f32.mxu1 %v4365_v0  ;;  %v971_v44 = vadd.f32 %v970_v36, %v4587_v34  ;;  %v1007_v53 = vmax.f32 %v880_v41, 0.0  ;;  %v1009_v54 = vmax.f32 %v969_v42, 0.0  ;;  %v4815_v36 = vpop.permute.xlu0 %1081 }
 0x12e   :  { %v885_v45 = vpop.f32.mrb[34].mxu0  ;;  %v974_v46 = vpop.f32.mrb[34].mxu1  ;;  %4118 = vmatprep.subr.bf16.mxu0 %v4117_v37  ;;  %4126 = vmatprep.subr.bf16.mxu1 %v4125_v38  ;;  %v1008_v57 = vmax.f32 %v882_v43, 0.0 }
 0x12f   :  { %v886_v47 = vadd.f32 %v885_v45, %v4589_v39  ;;  %v975_v49 = vadd.f32 %v974_v46, %v4589_v39  ;;  %3994 = vmatmul.mubr.msk.f32.gmra.mrb[62].mxu0 %vm1099_vm1, %v4662_v33  ;;  %v887_v50 = vpop.f32.mrb[35].mxu0  ;;  %v976_v51 = vpop.f32.mrb[35].mxu1  ;;  %4128 = vmatpush1.bf16.msra.mxu1 %v4127_v32  ;;  %v1010_v58 = vmax.f32 %v971_v44, 0.0 }
 0x130   :  { %3998 = vmatmul.mubr.msk.f32.gmra.mrb[62].mxu1 %vm1099_vm1, %v4662_v33  ;;  %v888_v52 = vadd.f32 %v887_v50, %v4589_v39  ;;  %v977_v34 = vadd.f32 %v976_v51, %v4589_v39  ;;  %4120 = vmatpush1.bf16.msra.mxu0 %v4119_v31  ;;  %v4817_v37 = vpop.permute.xlu1 %1086 }
 0x131   :  { %v1027_v55 = vmax.f32 %v886_v47, 0.0  ;;  %v1029_v56 = vmax.f32 %v975_v49, 0.0  ;;  %1710 = vmatprep.mubr.f32.mxu0 %v4365_v0  ;;  %1799 = vmatprep.mubr.f32.mxu1 %v4365_v0 }
 0x132   :  { %v1028_v59 = vmax.f32 %v888_v52, 0.0  ;;  %v1030_v60 = vmax.f32 %v977_v34, 0.0  ;;  %v891_v61 = vpop.f32.mrb[36].mxu0  ;;  %v980_v62 = vpop.f32.mrb[36].mxu1 }
 0x133   :  { %v4131_v63 = vpack.c.bf16 %v1027_v55, %v1007_v53  ;;  %v4139_v1 = vpack.c.bf16 %v1029_v56, %v1009_v54  ;;  %3999 = vmatmul.mubr.msk.f32.vlgmr.msra.gmra.mrb[64].mxu0 %vm1099_vm1, %v4620_v48  ;;  %v893_v39 = vpop.f32.mrb[37].mxu0  ;;  %v982_v3 = vpop.f32.mrb[37].mxu1  ;;  %v892_v7 = vadd.f32 %v891_v61, %v4591_v40  ;;  %v981_v8 = vadd.f32 %v980_v62, %v4591_v40 }
 0x134   :  { %v4129_v4 = vpack.c.bf16 %v1028_v59, %v1008_v57  ;;  %v4137_v5 = vpack.c.bf16 %v1030_v60, %v1010_v58  ;;  %4003 = vmatmul.mubr.msk.f32.vlgmr.msra.gmra.mrb[64].mxu1 %vm1099_vm1, %v4620_v48  ;;  %1716 = vmatprep.mubr.f32.mxu0 %v4365_v0  ;;  %v894_v9 = vadd.f32 %v893_v39, %v4591_v40 }
 0x135   :  { %1805 = vmatprep.mubr.f32.mxu1 %v4365_v0  ;;  %v983_v10 = vadd.f32 %v982_v3, %v4591_v40  ;;  %v1047_v19 = vmax.f32 %v892_v7, 0.0  ;;  %v1049_v20 = vmax.f32 %v981_v8, 0.0  ;;  %v4827_v3 = vpop.permute.xlu0 %1091  ;;  %v4829_v7 = vpop.permute.xlu1 %1096 }
 0x136   :  { %v897_v11 = vpop.f32.mrb[38].mxu0  ;;  %v986_v12 = vpop.f32.mrb[38].mxu1  ;;  %4130 = vmatprep.subr.bf16.mxu0 %v4129_v4  ;;  %4138 = vmatprep.subr.bf16.mxu1 %v4137_v5  ;;  %v1048_v23 = vmax.f32 %v894_v9, 0.0 }
 0x137   :  { %v898_v13 = vadd.f32 %v897_v11, %v4601_v6  ;;  %v987_v14 = vadd.f32 %v986_v12, %v4601_v6  ;;  %4000 = vmatmul.mubr.msk.f32.gmra.mrb[66].mxu0 %vm1099_vm1, %v4632_v2  ;;  %v899_v15 = vpop.f32.mrb[39].mxu0  ;;  %v988_v17 = vpop.f32.mrb[39].mxu1  ;;  %4140 = vmatpush1.bf16.msra.mxu1 %v4139_v1  ;;  %v1050_v24 = vmax.f32 %v983_v10, 0.0 }
 0x138   :  { %4004 = vmatmul.mubr.msk.f32.gmra.mrb[66].mxu1 %vm1099_vm1, %v4632_v2  ;;  %v900_v18 = vadd.f32 %v899_v15, %v4601_v6  ;;  %v989_v40 = vadd.f32 %v988_v17, %v4601_v6  ;;  %4132 = vmatpush1.bf16.msra.mxu0 %v4131_v63 }
 0x139   :  { %v1067_v21 = vmax.f32 %v898_v13, 0.0  ;;  %v1069_v22 = vmax.f32 %v987_v14, 0.0  ;;  %1722 = vmatprep.mubr.f32.mxu0 %v4365_v0  ;;  %1811 = vmatprep.mubr.f32.mxu1 %v4365_v0 }
 0x13a   :  { %v1068_v25 = vmax.f32 %v900_v18, 0.0  ;;  %v1070_v26 = vmax.f32 %v989_v40, 0.0 }
 0x13b   :  { %v4135_v27 = vpack.c.bf16 %v1067_v21, %v1047_v19  ;;  %v4143_v28 = vpack.c.bf16 %v1069_v22, %v1049_v20  ;;  %4001 = vmatmul.mubr.msk.f32.gmra.mrb[68].mxu0 %vm1099_vm1, %v4648_v16 }
 0x13c   :  { %v4133_v29 = vpack.c.bf16 %v1068_v25, %v1048_v23  ;;  %v4141_v6 = vpack.c.bf16 %v1070_v26, %v1050_v24  ;;  %4005 = vmatmul.mubr.msk.f32.gmra.mrb[68].mxu1 %vm1099_vm1, %v4648_v16  ;;  %1728 = vmatprep.mubr.f32.mxu0 %v4365_v0 }
 0x13d   :  { %1817 = vmatprep.mubr.f32.mxu1 %v4365_v0 }
 0x13e   :  { %4134 = vmatprep.subr.bf16.mxu0 %v4133_v29  ;;  %4142 = vmatprep.subr.bf16.mxu1 %v4141_v6 }
 0x13f   :  { %4002 = vmatmul.mubr.msk.f32.gmra.mrb[70].mxu0 %vm1099_vm1, %v4662_v33  ;;  %4144 = vmatpush1.bf16.msra.mxu1 %v4143_v28 }
 0x140   :  { %4006 = vmatmul.mubr.msk.f32.gmra.mrb[70].mxu1 %vm1099_vm1, %v4662_v33  ;;  %4136 = vmatpush1.bf16.msra.mxu0 %v4135_v27 }
 0x141   :  { %1888 = vmatprep.mubr.f32.mxu0 %v4365_v0  ;;  %1977 = vmatprep.mubr.f32.mxu1 %v4365_v0 }
 0x143   :  { %4007 = vmatmul.mubr.msk.f32.vlgmr.msra.gmra.mrb[72].mxu0 %vm1099_vm1, %v4620_v48 }
 0x144   :  { %4011 = vmatmul.mubr.msk.f32.vlgmr.msra.gmra.mrb[72].mxu1 %vm1099_vm1, %v4620_v48  ;;  %1894 = vmatprep.mubr.f32.mxu0 %v4365_v0 }
 0x145   :  { %1983 = vmatprep.mubr.f32.mxu1 %v4365_v0 }
 0x147   :  { %4008 = vmatmul.mubr.msk.f32.gmra.mrb[74].mxu0 %vm1099_vm1, %v4632_v2 }
 0x148   :  { %4012 = vmatmul.mubr.msk.f32.gmra.mrb[74].mxu1 %vm1099_vm1, %v4632_v2  ;;  %1900 = vmatprep.mubr.f32.mxu0 %v4365_v0 }
 0x149   :  { %1989 = vmatprep.mubr.f32.mxu1 %v4365_v0 }
 0x14b   :  { %4009 = vmatmul.mubr.msk.f32.gmra.mrb[76].mxu0 %vm1099_vm1, %v4648_v16 }
 0x14c   :  { %4013 = vmatmul.mubr.msk.f32.gmra.mrb[76].mxu1 %vm1099_vm1, %v4648_v16  ;;  %1906 = vmatprep.mubr.f32.mxu0 %v4365_v0 }
 0x14d   :  { %1995 = vmatprep.mubr.f32.mxu1 %v4365_v0 }
 0x14f   :  { %4010 = vmatmul.mubr.msk.f32.gmra.mrb[78].mxu0 %vm1099_vm1, %v4662_v33 }
 0x150   :  { %4014 = vmatmul.mubr.msk.f32.gmra.mrb[78].mxu1 %vm1099_vm1, %v4662_v33  ;;  %2146 = vmatprep.mubr.f32.mxu0 %v4365_v0 }
 0x151   :  { %2235 = vmatprep.mubr.f32.mxu1 %v4365_v0 }
 0x1d5   :  { %v1178_v30 = vpop.f32.mrb[40].mxu0  ;;  %v1267_v31 = vpop.f32.mrb[40].mxu1 }
 0x1d6   :  { %v1180_v32 = vpop.f32.mrb[41].mxu0  ;;  %v1269_v35 = vpop.f32.mrb[41].mxu1  ;;  %v1179_v38 = vadd.f32 %v1178_v30, %v4815_v36  ;;  %v1268_v41 = vadd.f32 %v1267_v31, %v4815_v36 }
 0x1d7   :  { %v1181_v42 = vadd.f32 %v1180_v32, %v4815_v36  ;;  %v1270_v43 = vadd.f32 %v1269_v35, %v4815_v36 }
 0x1d8   :  { %v2002_v34 = vmax.f32 %v1179_v38, 0.0  ;;  %v2004_v53 = vmax.f32 %v1268_v41, 0.0 }
 0x1d9   :  { %v1184_v44 = vpop.f32.mrb[42].mxu0  ;;  %v1273_v45 = vpop.f32.mrb[42].mxu1  ;;  %v2003_v56 = vmax.f32 %v1181_v42, 0.0  ;;  %v2005_v57 = vmax.f32 %v1270_v43, 0.0 }
 0x1da   :  { %v1185_v46 = vadd.f32 %v1184_v44, %v4817_v37  ;;  %v1274_v47 = vadd.f32 %v1273_v45, %v4817_v37  ;;  %v1186_v49 = vpop.f32.mrb[43].mxu0  ;;  %v1275_v50 = vpop.f32.mrb[43].mxu1 }
 0x1db   :  { %v1187_v51 = vadd.f32 %v1186_v49, %v4817_v37  ;;  %v1276_v52 = vadd.f32 %v1275_v50, %v4817_v37 }
 0x1dc   :  { %v2022_v54 = vmax.f32 %v1185_v46, 0.0  ;;  %v2024_v55 = vmax.f32 %v1274_v47, 0.0 }
 0x1dd   :  { %v2023_v58 = vmax.f32 %v1187_v51, 0.0  ;;  %v2025_v59 = vmax.f32 %v1276_v52, 0.0  ;;  %v1190_v60 = vpop.f32.mrb[44].mxu0  ;;  %v1279_v61 = vpop.f32.mrb[44].mxu1 }
 0x1de   :  { %v4147_v62 = vpack.c.bf16 %v2022_v54, %v2002_v34  ;;  %v4155_v63 = vpack.c.bf16 %v2024_v55, %v2004_v53  ;;  %v1192_v1 = vpop.f32.mrb[45].mxu0  ;;  %v1281_v39 = vpop.f32.mrb[45].mxu1  ;;  %v1191_v8 = vadd.f32 %v1190_v60, %v4827_v3  ;;  %v1280_v9 = vadd.f32 %v1279_v61, %v4827_v3 }
 0x1df   :  { %v4145_v4 = vpack.c.bf16 %v2023_v58, %v2003_v56  ;;  %v4153_v5 = vpack.c.bf16 %v2025_v59, %v2005_v57  ;;  %v1193_v10 = vadd.f32 %v1192_v1, %v4827_v3  ;;  %v1282_v11 = vadd.f32 %v1281_v39, %v4827_v3 }
 0x1e0   :  { %v2042_v20 = vmax.f32 %v1191_v8, 0.0  ;;  %v2044_v21 = vmax.f32 %v1280_v9, 0.0 }
 0x1e1   :  { %v1196_v12 = vpop.f32.mrb[46].mxu0  ;;  %v1285_v13 = vpop.f32.mrb[46].mxu1  ;;  %4146 = vmatprep.subr.bf16.mxu0 %v4145_v4  ;;  %4154 = vmatprep.subr.bf16.mxu1 %v4153_v5  ;;  %v2043_v24 = vmax.f32 %v1193_v10, 0.0  ;;  %v2045_v25 = vmax.f32 %v1282_v11, 0.0 }
 0x1e2   :  { %v1197_v14 = vadd.f32 %v1196_v12, %v4829_v7  ;;  %v1286_v15 = vadd.f32 %v1285_v13, %v4829_v7  ;;  %v1198_v17 = vpop.f32.mrb[47].mxu0  ;;  %v1287_v18 = vpop.f32.mrb[47].mxu1  ;;  %4148 = vmatpush1.bf16.msra.mxu0 %v4147_v62  ;;  %4156 = vmatpush1.bf16.msra.mxu1 %v4155_v63 }
 0x1e3   :  { %v1199_v40 = vadd.f32 %v1198_v17, %v4829_v7  ;;  %v1288_v19 = vadd.f32 %v1287_v18, %v4829_v7 }
 0x1e4   :  { %v2062_v22 = vmax.f32 %v1197_v14, 0.0  ;;  %v2064_v23 = vmax.f32 %v1286_v15, 0.0 }
 0x1e5   :  { %v2063_v26 = vmax.f32 %v1199_v40, 0.0  ;;  %v2065_v27 = vmax.f32 %v1288_v19, 0.0 }
 0x1e6   :  { %v4151_v28 = vpack.c.bf16 %v2062_v22, %v2042_v20  ;;  %v4159_v29 = vpack.c.bf16 %v2064_v23, %v2044_v21  ;;  %v1356_v6 = vpop.f32.mrb[48].mxu0  ;;  %v1445_v32 = vpop.f32.mrb[48].mxu1 }
 0x1e7   :  { %v4149_v30 = vpack.c.bf16 %v2063_v26, %v2043_v24  ;;  %v4157_v31 = vpack.c.bf16 %v2065_v27, %v2045_v25  ;;  %v1358_v35 = vpop.f32.mrb[49].mxu0  ;;  %v1447_v38 = vpop.f32.mrb[49].mxu1  ;;  %v1357_v41 = vadd.f32 %v1356_v6, %v4815_v36  ;;  %v1446_v42 = vadd.f32 %v1445_v32, %v4815_v36 }
 0x1e8   :  { %v1359_v43 = vadd.f32 %v1358_v35, %v4815_v36  ;;  %v1448_v45 = vadd.f32 %v1447_v38, %v4815_v36 }
 0x1e9   :  { %4150 = vmatprep.subr.bf16.mxu0 %v4149_v30  ;;  %4158 = vmatprep.subr.bf16.mxu1 %v4157_v31  ;;  %v2006_v34 = vmax.f32 %v1357_v41, 0.0  ;;  %v2008_v55 = vmax.f32 %v1446_v42, 0.0 }
 0x1ea   :  { %v1362_v44 = vpop.f32.mrb[50].mxu0  ;;  %4152 = vmatpush1.bf16.msra.mxu0 %v4151_v28  ;;  %4160 = vmatpush1.bf16.msra.mxu1 %v4159_v29  ;;  %v2007_v56 = vmax.f32 %v1359_v43, 0.0  ;;  %v2009_v60 = vmax.f32 %v1448_v45, 0.0 }
 0x1eb   :  { %v1363_v46 = vadd.f32 %v1362_v44, %v4817_v37  ;;  %v1451_v47 = vpop.f32.mrb[50].mxu1  ;;  %v1364_v49 = vpop.f32.mrb[51].mxu0 }
 0x1ec   :  { %v1452_v50 = vadd.f32 %v1451_v47, %v4817_v37  ;;  %v1365_v51 = vadd.f32 %v1364_v49, %v4817_v37  ;;  %v1453_v52 = vpop.f32.mrb[51].mxu1 }
 0x1ed   :  { %v2026_v53 = vmax.f32 %v1363_v46, 0.0  ;;  %v1454_v54 = vadd.f32 %v1453_v52, %v4817_v37  ;;  %4015 = vmatmul.mubr.msk.f32.vlgmr.msra.gmra.mrb[80].mxu0 %vm1099_vm1, %v4620_v48  ;;  %4019 = vmatmul.mubr.msk.f32.vlgmr.msra.gmra.mrb[80].mxu1 %vm1099_vm1, %v4620_v48 }
 0x1ee   :  { %v2028_v57 = vmax.f32 %v1452_v50, 0.0  ;;  %v2027_v58 = vmax.f32 %v1365_v51, 0.0  ;;  %v1368_v59 = vpop.f32.mrb[52].mxu0  ;;  %2152 = vmatprep.mubr.f32.mxu0 %v4365_v0  ;;  %2241 = vmatprep.mubr.f32.mxu1 %v4365_v0 }
 0x1ef   :  { %v4163_v61 = vpack.c.bf16 %v2026_v53, %v2006_v34  ;;  %v2029_v62 = vmax.f32 %v1454_v54, 0.0  ;;  %v1457_v63 = vpop.f32.mrb[52].mxu1  ;;  %v1370_v1 = vpop.f32.mrb[53].mxu0  ;;  %v1369_v9 = vadd.f32 %v1368_v59, %v4827_v3 }
 0x1f0   :  { %v4171_v39 = vpack.c.bf16 %v2028_v57, %v2008_v55  ;;  %v4161_v4 = vpack.c.bf16 %v2027_v58, %v2007_v56  ;;  %v1459_v5 = vpop.f32.mrb[53].mxu1  ;;  %v1458_v10 = vadd.f32 %v1457_v63, %v4827_v3  ;;  %v1371_v11 = vadd.f32 %v1370_v1, %v4827_v3 }
 0x1f1   :  { %v4169_v8 = vpack.c.bf16 %v2029_v62, %v2009_v60  ;;  %4016 = vmatmul.mubr.msk.f32.gmra.mrb[82].mxu0 %vm1099_vm1, %v4632_v2  ;;  %4020 = vmatmul.mubr.msk.f32.gmra.mrb[82].mxu1 %vm1099_vm1, %v4632_v2  ;;  %v1460_v13 = vadd.f32 %v1459_v5, %v4827_v3  ;;  %v2046_v20 = vmax.f32 %v1369_v9, 0.0 }
 0x1f2   :  { %v1374_v12 = vpop.f32.mrb[54].mxu0  ;;  %4162 = vmatprep.subr.bf16.mxu0 %v4161_v4  ;;  %2158 = vmatprep.mubr.f32.mxu0 %v4365_v0  ;;  %v2048_v23 = vmax.f32 %v1458_v10, 0.0  ;;  %v2047_v24 = vmax.f32 %v1371_v11, 0.0 }
 0x1f3   :  { %v1375_v14 = vadd.f32 %v1374_v12, %v4829_v7  ;;  %v1463_v15 = vpop.f32.mrb[54].mxu1  ;;  %4170 = vmatprep.subr.bf16.mxu1 %v4169_v8  ;;  %v1376_v17 = vpop.f32.mrb[55].mxu0  ;;  %4164 = vmatpush1.bf16.msra.mxu0 %v4163_v61  ;;  %v2049_v28 = vmax.f32 %v1460_v13, 0.0 }
 0x1f4   :  { %v1464_v18 = vadd.f32 %v1463_v15, %v4829_v7  ;;  %v1377_v40 = vadd.f32 %v1376_v17, %v4829_v7  ;;  %v1465_v19 = vpop.f32.mrb[55].mxu1  ;;  %4172 = vmatpush1.bf16.msra.mxu1 %v4171_v39  ;;  %2247 = vmatprep.mubr.f32.mxu1 %v4365_v0 }
 0x1f5   :  { %v2066_v21 = vmax.f32 %v1375_v14, 0.0  ;;  %v1466_v22 = vadd.f32 %v1465_v19, %v4829_v7  ;;  %4017 = vmatmul.mubr.msk.f32.gmra.mrb[84].mxu0 %vm1099_vm1, %v4648_v16  ;;  %4021 = vmatmul.mubr.msk.f32.gmra.mrb[84].mxu1 %vm1099_vm1, %v4648_v16 }
 0x1f6   :  { %v2068_v25 = vmax.f32 %v1464_v18, 0.0  ;;  %v2067_v26 = vmax.f32 %v1377_v40, 0.0  ;;  %v1534_v27 = vpop.f32.mrb[56].mxu0  ;;  %2164 = vmatprep.mubr.f32.mxu0 %v4365_v0  ;;  %2253 = vmatprep.mubr.f32.mxu1 %v4365_v0 }
 0x1f7   :  { %v4167_v29 = vpack.c.bf16 %v2066_v21, %v2046_v20  ;;  %v2069_v6 = vmax.f32 %v1466_v22, 0.0  ;;  %v1623_v30 = vpop.f32.mrb[56].mxu1  ;;  %v1536_v31 = vpop.f32.mrb[57].mxu0  ;;  %v1535_v42 = vadd.f32 %v1534_v27, %v4815_v36 }
 0x1f8   :  { %v4175_v32 = vpack.c.bf16 %v2068_v25, %v2048_v23  ;;  %v4165_v35 = vpack.c.bf16 %v2067_v26, %v2047_v24  ;;  %v1625_v38 = vpop.f32.mrb[57].mxu1  ;;  %v1624_v43 = vadd.f32 %v1623_v30, %v4815_v36  ;;  %v1537_v44 = vadd.f32 %v1536_v31, %v4815_v36 }
 0x1f9   :  { %v4173_v41 = vpack.c.bf16 %v2069_v6, %v2049_v28  ;;  %4018 = vmatmul.mubr.msk.f32.gmra.mrb[86].mxu0 %vm1099_vm1, %v4662_v33  ;;  %4022 = vmatmul.mubr.msk.f32.gmra.mrb[86].mxu1 %vm1099_vm1, %v4662_v33  ;;  %v1626_v46 = vadd.f32 %v1625_v38, %v4815_v36  ;;  %v2010_v53 = vmax.f32 %v1535_v42, 0.0 }
 0x1fa   :  { %v1540_v45 = vpop.f32.mrb[58].mxu0  ;;  %4166 = vmatprep.subr.bf16.mxu0 %v4165_v35  ;;  %2324 = vmatprep.mubr.f32.mxu0 %v4365_v0  ;;  %v2012_v56 = vmax.f32 %v1624_v43, 0.0  ;;  %v2011_v57 = vmax.f32 %v1537_v44, 0.0 }
 0x1fb   :  { %v1541_v47 = vadd.f32 %v1540_v45, %v4817_v37  ;;  %v1629_v49 = vpop.f32.mrb[58].mxu1  ;;  %4174 = vmatprep.subr.bf16.mxu1 %v4173_v41  ;;  %v1542_v50 = vpop.f32.mrb[59].mxu0  ;;  %4168 = vmatpush1.bf16.msra.mxu0 %v4167_v29  ;;  %v2013_v61 = vmax.f32 %v1626_v46, 0.0 }
 0x1fc   :  { %v1630_v51 = vadd.f32 %v1629_v49, %v4817_v37  ;;  %v1543_v52 = vadd.f32 %v1542_v50, %v4817_v37  ;;  %v1631_v34 = vpop.f32.mrb[59].mxu1  ;;  %4176 = vmatpush1.bf16.msra.mxu1 %v4175_v32  ;;  %2413 = vmatprep.mubr.f32.mxu1 %v4365_v0 }
 0x1fd   :  { %v2030_v54 = vmax.f32 %v1541_v47, 0.0  ;;  %v1632_v55 = vadd.f32 %v1631_v34, %v4817_v37 }
 0x1fe   :  { %v2032_v58 = vmax.f32 %v1630_v51, 0.0  ;;  %v2031_v59 = vmax.f32 %v1543_v52, 0.0  ;;  %v1546_v60 = vpop.f32.mrb[60].mxu0  ;;  %4023 = vmatmul.mubr.msk.f32.vlgmr.msra.gmra.mrb[88].mxu0 %vm1099_vm1, %v4620_v48 }
 0x1ff   :  { %v4179_v62 = vpack.c.bf16 %v2030_v54, %v2010_v53  ;;  %v2033_v63 = vmax.f32 %v1632_v55, 0.0  ;;  %v1635_v1 = vpop.f32.mrb[60].mxu1  ;;  %4027 = vmatmul.mubr.msk.f32.vlgmr.msra.gmra.mrb[88].mxu1 %vm1099_vm1, %v4620_v48  ;;  %v1548_v39 = vpop.f32.mrb[61].mxu0  ;;  %2330 = vmatprep.mubr.f32.mxu0 %v4365_v0  ;;  %v1547_v10 = vadd.f32 %v1546_v60, %v4827_v3 }
 0x200   :  { %v4187_v4 = vpack.c.bf16 %v2032_v58, %v2012_v56  ;;  %v4177_v5 = vpack.c.bf16 %v2031_v59, %v2011_v57  ;;  %v1637_v8 = vpop.f32.mrb[61].mxu1  ;;  %2419 = vmatprep.mubr.f32.mxu1 %v4365_v0  ;;  %v1636_v11 = vadd.f32 %v1635_v1, %v4827_v3  ;;  %v1549_v12 = vadd.f32 %v1548_v39, %v4827_v3 }
 0x201   :  { %v4185_v9 = vpack.c.bf16 %v2033_v63, %v2013_v61  ;;  %v1638_v48 = vadd.f32 %v1637_v8, %v4827_v3  ;;  %v2050_v20 = vmax.f32 %v1547_v10, 0.0 }
 0x202   :  { %v1552_v13 = vpop.f32.mrb[62].mxu0  ;;  %4024 = vmatmul.mubr.msk.f32.gmra.mrb[90].mxu0 %vm1099_vm1, %v4632_v2  ;;  %4178 = vmatprep.subr.bf16.mxu0 %v4177_v5  ;;  %v2052_v23 = vmax.f32 %v1636_v11, 0.0  ;;  %v2051_v24 = vmax.f32 %v1549_v12, 0.0 }
 0x203   :  { %v1553_v14 = vadd.f32 %v1552_v13, %v4829_v7  ;;  %v1641_v15 = vpop.f32.mrb[62].mxu1  ;;  %4028 = vmatmul.mubr.msk.f32.gmra.mrb[90].mxu1 %vm1099_vm1, %v4632_v2  ;;  %4186 = vmatprep.subr.bf16.mxu1 %v4185_v9  ;;  %v1554_v17 = vpop.f32.mrb[63].mxu0  ;;  %v2053_v27 = vmax.f32 %v1638_v48, 0.0 }
 0x204   :  { %v1642_v18 = vadd.f32 %v1641_v15, %v4829_v7  ;;  %v1555_v40 = vadd.f32 %v1554_v17, %v4829_v7  ;;  %v1643_v19 = vpop.f32.mrb[63].mxu1  ;;  %4180 = vmatpush1.bf16.msra.mxu0 %v4179_v62  ;;  %4188 = vmatpush1.bf16.msra.mxu1 %v4187_v4  ;;  %v4930_v62 = vld [vmem:[%s5215_s3] sm:$0xff] }
 0x205   :  { %v2070_v21 = vmax.f32 %v1553_v14, 0.0  ;;  %v1644_v22 = vadd.f32 %v1643_v19, %v4829_v7  ;;  %2336 = vmatprep.mubr.f32.mxu0 %v4365_v0  ;;  %2425 = vmatprep.mubr.f32.mxu1 %v4365_v0  ;;  %v4946_v14 = vld [vmem:[%s5215_s3 + $0x8] sm:$0xff] }
 0x206   :  { %v2072_v2 = vmax.f32 %v1642_v18, 0.0  ;;  %v2071_v25 = vmax.f32 %v1555_v40, 0.0  ;;  %v1712_v26 = vpop.f32.mrb[64].mxu0  ;;  %4025 = vmatmul.mubr.msk.f32.gmra.mrb[92].mxu0 %vm1099_vm1, %v4648_v16 }
 0x207   :  { %v4183_v28 = vpack.c.bf16 %v2070_v21, %v2050_v20  ;;  %v2073_v29 = vmax.f32 %v1644_v22, 0.0  ;;  %v1801_v6 = vpop.f32.mrb[64].mxu1  ;;  %4029 = vmatmul.mubr.msk.f32.gmra.mrb[92].mxu1 %vm1099_vm1, %v4648_v16  ;;  %v1714_v30 = vpop.f32.mrb[65].mxu0  ;;  %2342 = vmatprep.mubr.f32.mxu0 %v4365_v0  ;;  %v1713_v41 = vadd.f32 %v1712_v26, %v4815_v36 }
 0x208   :  { %v4191_v31 = vpack.c.bf16 %v2072_v2, %v2052_v23  ;;  %v4181_v32 = vpack.c.bf16 %v2071_v25, %v2051_v24  ;;  %v1803_v35 = vpop.f32.mrb[65].mxu1  ;;  %2431 = vmatprep.mubr.f32.mxu1 %v4365_v0  ;;  %v1802_v42 = vadd.f32 %v1801_v6, %v4815_v36  ;;  %v1715_v43 = vadd.f32 %v1714_v30, %v4815_v36  ;;  %v4960_v6 = vld [vmem:[%s5215_s3 + $0x10] sm:$0xff] }
 0x209   :  { %v4189_v38 = vpack.c.bf16 %v2073_v29, %v2053_v27  ;;  %v1804_v16 = vadd.f32 %v1803_v35, %v4815_v36  ;;  %v2014_v52 = vmax.f32 %v1713_v41, 0.0 }
 0x20a   :  { %v1718_v44 = vpop.f32.mrb[66].mxu0  ;;  %4026 = vmatmul.mubr.msk.f32.gmra.mrb[94].mxu0 %vm1099_vm1, %v4662_v33  ;;  %4182 = vmatprep.subr.bf16.mxu0 %v4181_v32  ;;  %v2016_v54 = vmax.f32 %v1802_v42, 0.0  ;;  %v2015_v55 = vmax.f32 %v1715_v43, 0.0 }
 0x20b   :  { %v1719_v45 = vadd.f32 %v1718_v44, %v4817_v37  ;;  %v1807_v46 = vpop.f32.mrb[66].mxu1  ;;  %4030 = vmatmul.mubr.msk.f32.gmra.mrb[94].mxu1 %vm1099_vm1, %v4662_v33  ;;  %4190 = vmatprep.subr.bf16.mxu1 %v4189_v38  ;;  %v1720_v47 = vpop.f32.mrb[67].mxu0  ;;  %v2017_v58 = vmax.f32 %v1804_v16, 0.0 }
 0x20c   :  { %v1808_v49 = vadd.f32 %v1807_v46, %v4817_v37  ;;  %v1721_v50 = vadd.f32 %v1720_v47, %v4817_v37  ;;  %v1809_v51 = vpop.f32.mrb[67].mxu1  ;;  %4184 = vmatpush1.bf16.msra.mxu0 %v4183_v28  ;;  %4192 = vmatpush1.bf16.msra.mxu1 %v4191_v31  ;;  %v4976_v47 = vld [vmem:[%s5215_s3 + $0x18] sm:$0xff] }
 0x20d   :  { %v2034_v34 = vmax.f32 %v1719_v45, 0.0  ;;  %v1810_v53 = vadd.f32 %v1809_v51, %v4817_v37  ;;  %2502 = vmatprep.mubr.f32.mxu0 %v4365_v0  ;;  %2591 = vmatprep.mubr.f32.mxu1 %v4365_v0 }
 0x20e   :  { %v2036_v33 = vmax.f32 %v1808_v49, 0.0  ;;  %v2035_v56 = vmax.f32 %v1721_v50, 0.0  ;;  %v1724_v57 = vpop.f32.mrb[68].mxu0 }
 0x20f   :  { %v4195_v59 = vpack.c.bf16 %v2034_v34, %v2014_v52  ;;  %v2037_v60 = vmax.f32 %v1810_v53, 0.0  ;;  %v1813_v61 = vpop.f32.mrb[68].mxu1  ;;  %4031 = vmatmul.mubr.msk.f32.vlgmr.msra.gmra.mrb[96].mxu0 %vm1099_vm1, %v4930_v62  ;;  %4035 = vmatmul.mubr.msk.f32.vlgmr.msra.gmra.mrb[96].mxu1 %vm1099_vm1, %v4930_v62  ;;  %v1726_v63 = vpop.f32.mrb[69].mxu0  ;;  %v1725_v8 = vadd.f32 %v1724_v57, %v4827_v3 }
 0x210   :  { %v4203_v1 = vpack.c.bf16 %v2036_v33, %v2016_v54  ;;  %v4193_v39 = vpack.c.bf16 %v2035_v56, %v2015_v55  ;;  %v1815_v4 = vpop.f32.mrb[69].mxu1  ;;  %2508 = vmatprep.mubr.f32.mxu0 %v4365_v0  ;;  %2597 = vmatprep.mubr.f32.mxu1 %v4365_v0  ;;  %v1814_v9 = vadd.f32 %v1813_v61, %v4827_v3 }
 0x211   :  { %v4201_v5 = vpack.c.bf16 %v2037_v60, %v2017_v58  ;;  %v1727_v10 = vadd.f32 %v1726_v63, %v4827_v3  ;;  %v1816_v12 = vadd.f32 %v1815_v4, %v4827_v3  ;;  %v2054_v19 = vmax.f32 %v1725_v8, 0.0 }
 0x212   :  { %v1730_v11 = vpop.f32.mrb[70].mxu0  ;;  %4194 = vmatprep.subr.bf16.mxu0 %v4193_v39  ;;  %v2056_v22 = vmax.f32 %v1814_v9, 0.0 }
 0x213   :  { %v1731_v13 = vadd.f32 %v1730_v11, %v4829_v7  ;;  %v1819_v48 = vpop.f32.mrb[70].mxu1  ;;  %4032 = vmatmul.mubr.msk.f32.gmra.mrb[98].mxu0 %vm1099_vm1, %v4946_v14  ;;  %4036 = vmatmul.mubr.msk.f32.gmra.mrb[98].mxu1 %vm1099_vm1, %v4946_v14  ;;  %v1732_v15 = vpop.f32.mrb[71].mxu0  ;;  %v2055_v23 = vmax.f32 %v1727_v10, 0.0  ;;  %v2057_v26 = vmax.f32 %v1816_v12, 0.0 }
 0x214   :  { %v1820_v17 = vadd.f32 %v1819_v48, %v4829_v7  ;;  %4202 = vmatprep.subr.bf16.mxu1 %v4201_v5  ;;  %v1733_v18 = vadd.f32 %v1732_v15, %v4829_v7  ;;  %v1821_v40 = vpop.f32.mrb[71].mxu1  ;;  %4196 = vmatpush1.bf16.msra.mxu0 %v4195_v59 }
 0x215   :  { %v2074_v20 = vmax.f32 %v1731_v13, 0.0  ;;  %v1822_v21 = vadd.f32 %v1821_v40, %v4829_v7  ;;  %4204 = vmatpush1.bf16.msra.mxu1 %v4203_v1  ;;  %2514 = vmatprep.mubr.f32.mxu0 %v4365_v0 }
 0x216   :  { %v2076_v24 = vmax.f32 %v1820_v17, 0.0  ;;  %v2075_v2 = vmax.f32 %v1733_v18, 0.0  ;;  %2603 = vmatprep.mubr.f32.mxu1 %v4365_v0  ;;  %v1890_v25 = vpop.f32.mrb[72].mxu0 }
 0x217   :  { %v4199_v27 = vpack.c.bf16 %v2074_v20, %v2054_v19  ;;  %v2077_v28 = vmax.f32 %v1822_v21, 0.0  ;;  %v1979_v29 = vpop.f32.mrb[72].mxu1  ;;  %4033 = vmatmul.mubr.msk.f32.gmra.mrb[100].mxu0 %vm1099_vm1, %v4960_v6  ;;  %4037 = vmatmul.mubr.msk.f32.gmra.mrb[100].mxu1 %vm1099_vm1, %v4960_v6  ;;  %v1892_v30 = vpop.f32.mrb[73].mxu0  ;;  %v1891_v41 = vadd.f32 %v1890_v25, %v4815_v36 }
 0x218   :  { %v4207_v31 = vpack.c.bf16 %v2076_v24, %v2056_v22  ;;  %v4197_v32 = vpack.c.bf16 %v2075_v2, %v2055_v23  ;;  %v1981_v35 = vpop.f32.mrb[73].mxu1  ;;  %2520 = vmatprep.mubr.f32.mxu0 %v4365_v0  ;;  %2609 = vmatprep.mubr.f32.mxu1 %v4365_v0  ;;  %v1980_v42 = vadd.f32 %v1979_v29, %v4815_v36 }
 0x219   :  { %v4205_v38 = vpack.c.bf16 %v2077_v28, %v2057_v26  ;;  %v1893_v43 = vadd.f32 %v1892_v30, %v4815_v36  ;;  %v1982_v16 = vadd.f32 %v1981_v35, %v4815_v36  ;;  %v2018_v34 = vmax.f32 %v1891_v41, 0.0 }
 0x21a   :  { %v1896_v44 = vpop.f32.mrb[74].mxu0  ;;  %4198 = vmatprep.subr.bf16.mxu0 %v4197_v32  ;;  %v2020_v55 = vmax.f32 %v1980_v42, 0.0 }
 0x21b   :  { %v1897_v45 = vadd.f32 %v1896_v44, %v4817_v37  ;;  %v1985_v46 = vpop.f32.mrb[74].mxu1  ;;  %4034 = vmatmul.mubr.msk.f32.gmra.mrb[102].mxu0 %vm1099_vm1, %v4976_v47  ;;  %4038 = vmatmul.mubr.msk.f32.gmra.mrb[102].mxu1 %vm1099_vm1, %v4976_v47  ;;  %v1898_v49 = vpop.f32.mrb[75].mxu0  ;;  %v2019_v33 = vmax.f32 %v1893_v43, 0.0  ;;  %v2021_v59 = vmax.f32 %v1982_v16, 0.0 }
 0x21c   :  { %v1986_v50 = vadd.f32 %v1985_v46, %v4817_v37  ;;  %4206 = vmatprep.subr.bf16.mxu1 %v4205_v38  ;;  %v1899_v51 = vadd.f32 %v1898_v49, %v4817_v37  ;;  %v1987_v52 = vpop.f32.mrb[75].mxu1  ;;  %4200 = vmatpush1.bf16.msra.mxu0 %v4199_v27 }
 0x21d   :  { %v2038_v53 = vmax.f32 %v1897_v45, 0.0  ;;  %v1988_v54 = vadd.f32 %v1987_v52, %v4817_v37  ;;  %4208 = vmatpush1.bf16.msra.mxu1 %v4207_v31  ;;  %2680 = vmatprep.mubr.f32.mxu0 %v4365_v0 }
 0x21e   :  { %v2040_v56 = vmax.f32 %v1986_v50, 0.0  ;;  %v2039_v57 = vmax.f32 %v1899_v51, 0.0  ;;  %2769 = vmatprep.mubr.f32.mxu1 %v4365_v0  ;;  %v1902_v58 = vpop.f32.mrb[76].mxu0 }
 0x21f   :  { %v4211_v60 = vpack.c.bf16 %v2038_v53, %v2018_v34  ;;  %v2041_v61 = vmax.f32 %v1988_v54, 0.0  ;;  %v1991_v63 = vpop.f32.mrb[76].mxu1  ;;  %4039 = vmatmul.mubr.msk.f32.vlgmr.msra.gmra.mrb[104].mxu0 %vm1099_vm1, %v4930_v62  ;;  %v1904_v1 = vpop.f32.mrb[77].mxu0  ;;  %v1903_v9 = vadd.f32 %v1902_v58, %v4827_v3 }
 0x220   :  { %v4219_v39 = vpack.c.bf16 %v2040_v56, %v2020_v55  ;;  %v4209_v4 = vpack.c.bf16 %v2039_v57, %v2019_v33  ;;  %4043 = vmatmul.mubr.msk.f32.vlgmr.msra.gmra.mrb[104].mxu1 %vm1099_vm1, %v4930_v62  ;;  %v1993_v5 = vpop.f32.mrb[77].mxu1  ;;  %2686 = vmatprep.mubr.f32.mxu0 %v4365_v0  ;;  %v1992_v10 = vadd.f32 %v1991_v63, %v4827_v3 }
 0x221   :  { %v4217_v8 = vpack.c.bf16 %v2041_v61, %v2021_v59  ;;  %2775 = vmatprep.mubr.f32.mxu1 %v4365_v0  ;;  %v1905_v11 = vadd.f32 %v1904_v1, %v4827_v3  ;;  %v1994_v13 = vadd.f32 %v1993_v5, %v4827_v3  ;;  %v2058_v20 = vmax.f32 %v1903_v9, 0.0 }
 0x222   :  { %v1908_v12 = vpop.f32.mrb[78].mxu0  ;;  %4210 = vmatprep.subr.bf16.mxu0 %v4209_v4  ;;  %v2060_v23 = vmax.f32 %v1992_v10, 0.0 }
 0x223   :  { %v1909_v48 = vadd.f32 %v1908_v12, %v4829_v7  ;;  %v1997_v15 = vpop.f32.mrb[78].mxu1  ;;  %4040 = vmatmul.mubr.msk.f32.gmra.mrb[106].mxu0 %vm1099_vm1, %v4946_v14  ;;  %4218 = vmatprep.subr.bf16.mxu1 %v4217_v8  ;;  %v1910_v17 = vpop.f32.mrb[79].mxu0  ;;  %v2059_v24 = vmax.f32 %v1905_v11, 0.0  ;;  %v2061_v26 = vmax.f32 %v1994_v13, 0.0 }
 0x224   :  { %v1998_v18 = vadd.f32 %v1997_v15, %v4829_v7  ;;  %4044 = vmatmul.mubr.msk.f32.gmra.mrb[106].mxu1 %vm1099_vm1, %v4946_v14  ;;  %v1911_v40 = vadd.f32 %v1910_v17, %v4829_v7  ;;  %v1999_v19 = vpop.f32.mrb[79].mxu1  ;;  %4212 = vmatpush1.bf16.msra.mxu0 %v4211_v60 }
 0x225   :  { %v2078_v21 = vmax.f32 %v1909_v48, 0.0  ;;  %v2000_v22 = vadd.f32 %v1999_v19, %v4829_v7  ;;  %4220 = vmatpush1.bf16.msra.mxu1 %v4219_v39  ;;  %2692 = vmatprep.mubr.f32.mxu0 %v4365_v0 }
 0x226   :  { %v2080_v2 = vmax.f32 %v1998_v18, 0.0  ;;  %v2079_v25 = vmax.f32 %v1911_v40, 0.0  ;;  %2781 = vmatprep.mubr.f32.mxu1 %v4365_v0 }
 0x227   :  { %v4215_v27 = vpack.c.bf16 %v2078_v21, %v2058_v20  ;;  %v2081_v28 = vmax.f32 %v2000_v22, 0.0  ;;  %4041 = vmatmul.mubr.msk.f32.gmra.mrb[108].mxu0 %vm1099_vm1, %v4960_v6 }
 0x228   :  { %v4223_v29 = vpack.c.bf16 %v2080_v2, %v2060_v23  ;;  %v4213_v30 = vpack.c.bf16 %v2079_v25, %v2059_v24  ;;  %4045 = vmatmul.mubr.msk.f32.gmra.mrb[108].mxu1 %vm1099_vm1, %v4960_v6  ;;  %2698 = vmatprep.mubr.f32.mxu0 %v4365_v0 }
 0x229   :  { %v4221_v31 = vpack.c.bf16 %v2081_v28, %v2061_v26  ;;  %2787 = vmatprep.mubr.f32.mxu1 %v4365_v0 }
 0x22a   :  { %4214 = vmatprep.subr.bf16.mxu0 %v4213_v30 }
 0x22b   :  { %4042 = vmatmul.mubr.msk.f32.gmra.mrb[110].mxu0 %vm1099_vm1, %v4976_v47  ;;  %4222 = vmatprep.subr.bf16.mxu1 %v4221_v31 }
 0x22c   :  { %4046 = vmatmul.mubr.msk.f32.gmra.mrb[110].mxu1 %vm1099_vm1, %v4976_v47  ;;  %4216 = vmatpush1.bf16.msra.mxu0 %v4215_v27 }
 0x22d   :  { %4224 = vmatpush1.bf16.msra.mxu1 %v4223_v29  ;;  %2858 = vmatprep.mubr.f32.mxu0 %v4365_v0 }
 0x22e   :  { %2947 = vmatprep.mubr.f32.mxu1 %v4365_v0 }
 0x22f   :  { %4047 = vmatmul.mubr.msk.f32.vlgmr.msra.gmra.mrb[112].mxu0 %vm1099_vm1, %v4930_v62 }
 0x230   :  { %4051 = vmatmul.mubr.msk.f32.vlgmr.msra.gmra.mrb[112].mxu1 %vm1099_vm1, %v4930_v62  ;;  %2864 = vmatprep.mubr.f32.mxu0 %v4365_v0 }
 0x231   :  { %2953 = vmatprep.mubr.f32.mxu1 %v4365_v0 }
 0x233   :  { %4048 = vmatmul.mubr.msk.f32.gmra.mrb[114].mxu0 %vm1099_vm1, %v4946_v14 }
 0x234   :  { %4052 = vmatmul.mubr.msk.f32.gmra.mrb[114].mxu1 %vm1099_vm1, %v4946_v14  ;;  %2870 = vmatprep.mubr.f32.mxu0 %v4365_v0 }
 0x235   :  { %2959 = vmatprep.mubr.f32.mxu1 %v4365_v0 }
 0x237   :  { %4049 = vmatmul.mubr.msk.f32.gmra.mrb[116].mxu0 %vm1099_vm1, %v4960_v6 }
 0x238   :  { %4053 = vmatmul.mubr.msk.f32.gmra.mrb[116].mxu1 %vm1099_vm1, %v4960_v6  ;;  %2876 = vmatprep.mubr.f32.mxu0 %v4365_v0 }
 0x239   :  { %2965 = vmatprep.mubr.f32.mxu1 %v4365_v0 }
 0x23b   :  { %4050 = vmatmul.mubr.msk.f32.gmra.mrb[118].mxu0 %vm1099_vm1, %v4976_v47 }
 0x23c   :  { %4054 = vmatmul.mubr.msk.f32.gmra.mrb[118].mxu1 %vm1099_vm1, %v4976_v47  ;;  %3122 = vmatprep.mubr.f32.mxu0 %v4365_v0 }
 0x23d   :  { %3193 = vmatprep.mubr.f32.mxu1 %v4365_v0 }
 0x2c0   :  { %v2148_v62 = vpop.f32.mrb[80].mxu0  ;;  %v2237_v14 = vpop.f32.mrb[80].mxu1 }
 0x2c1   :  { %v2150_v32 = vpop.f32.mrb[81].mxu0  ;;  %v2239_v35 = vpop.f32.mrb[81].mxu1  ;;  %v2149_v6 = vadd.f32 %v2148_v62, %v4815_v36  ;;  %v2238_v38 = vadd.f32 %v2237_v14, %v4815_v36 }
 0x2c2   :  { %v2151_v41 = vadd.f32 %v2150_v32, %v4815_v36  ;;  %v2240_v42 = vadd.f32 %v2239_v35, %v4815_v36 }
 0x2c3   :  { %v2972_v51 = vmax.f32 %v2149_v6, 0.0  ;;  %v2974_v52 = vmax.f32 %v2238_v38, 0.0  ;;  %v5065_v38 = vld [vmem:[%s5217_s5] sm:$0x1] }
 0x2c4   :  { %v2154_v43 = vpop.f32.mrb[82].mxu0  ;;  %v2243_v44 = vpop.f32.mrb[82].mxu1  ;;  %v2973_v54 = vmax.f32 %v2151_v41, 0.0  ;;  %v2975_v55 = vmax.f32 %v2240_v42, 0.0 }
 0x2c5   :  { %v2155_v16 = vadd.f32 %v2154_v43, %v4817_v37  ;;  %v2244_v45 = vadd.f32 %v2243_v44, %v4817_v37  ;;  %v2156_v46 = vpop.f32.mrb[83].mxu0  ;;  %v2245_v47 = vpop.f32.mrb[83].mxu1 }
 0x2c6   :  { %v2157_v49 = vadd.f32 %v2156_v46, %v4817_v37  ;;  %v2246_v50 = vadd.f32 %v2245_v47, %v4817_v37 }
 0x2c7   :  { %v2992_v34 = vmax.f32 %v2155_v16, 0.0  ;;  %v2994_v53 = vmax.f32 %v2244_v45, 0.0 }
 0x2c8   :  { %v2993_v33 = vmax.f32 %v2157_v49, 0.0  ;;  %v2995_v56 = vmax.f32 %v2246_v50, 0.0  ;;  %v2160_v57 = vpop.f32.mrb[84].mxu0  ;;  %v2249_v58 = vpop.f32.mrb[84].mxu1 }
 0x2c9   :  { %v4227_v59 = vpack.c.bf16 %v2992_v34, %v2972_v51  ;;  %v4235_v60 = vpack.c.bf16 %v2994_v53, %v2974_v52  ;;  %v2162_v61 = vpop.f32.mrb[85].mxu0  ;;  %v2251_v63 = vpop.f32.mrb[85].mxu1  ;;  %v2161_v4 = vadd.f32 %v2160_v57, %v4827_v3  ;;  %v2250_v5 = vadd.f32 %v2249_v58, %v4827_v3 }
 0x2ca   :  { %v4225_v1 = vpack.c.bf16 %v2993_v33, %v2973_v54  ;;  %v4233_v39 = vpack.c.bf16 %v2995_v56, %v2975_v55  ;;  %v2163_v8 = vadd.f32 %v2162_v61, %v4827_v3  ;;  %v2252_v9 = vadd.f32 %v2251_v63, %v4827_v3 }
 0x2cb   :  { %v3012_v40 = vmax.f32 %v2161_v4, 0.0  ;;  %v3014_v19 = vmax.f32 %v2250_v5, 0.0 }
 0x2cc   :  { %v2166_v10 = vpop.f32.mrb[86].mxu0  ;;  %v2255_v11 = vpop.f32.mrb[86].mxu1  ;;  %4226 = vmatprep.subr.bf16.mxu0 %v4225_v1  ;;  %4234 = vmatprep.subr.bf16.mxu1 %v4233_v39  ;;  %v3013_v22 = vmax.f32 %v2163_v8, 0.0  ;;  %v3015_v23 = vmax.f32 %v2252_v9, 0.0 }
 0x2cd   :  { %v2167_v12 = vadd.f32 %v2166_v10, %v4829_v7  ;;  %v2256_v13 = vadd.f32 %v2255_v11, %v4829_v7  ;;  %v2168_v48 = vpop.f32.mrb[87].mxu0  ;;  %v2257_v15 = vpop.f32.mrb[87].mxu1  ;;  %4228 = vmatpush1.bf16.msra.mxu0 %v4227_v59  ;;  %4236 = vmatpush1.bf16.msra.mxu1 %v4235_v60 }
 0x2ce   :  { %v2169_v17 = vadd.f32 %v2168_v48, %v4829_v7  ;;  %v2258_v18 = vadd.f32 %v2257_v15, %v4829_v7 }
 0x2cf   :  { %v3032_v20 = vmax.f32 %v2167_v12, 0.0  ;;  %v3034_v21 = vmax.f32 %v2256_v13, 0.0 }
 0x2d0   :  { %v3033_v24 = vmax.f32 %v2169_v17, 0.0  ;;  %v3035_v2 = vmax.f32 %v2258_v18, 0.0 }
 0x2d1   :  { %v4231_v25 = vpack.c.bf16 %v3032_v20, %v3012_v40  ;;  %v4239_v26 = vpack.c.bf16 %v3034_v21, %v3014_v19  ;;  %v2326_v27 = vpop.f32.mrb[88].mxu0 }
 0x2d2   :  { %v4229_v28 = vpack.c.bf16 %v3033_v24, %v3013_v22  ;;  %v4237_v29 = vpack.c.bf16 %v3035_v2, %v3015_v23  ;;  %v2415_v30 = vpop.f32.mrb[88].mxu1  ;;  %v2328_v31 = vpop.f32.mrb[89].mxu0  ;;  %v2327_v14 = vadd.f32 %v2326_v27, %v4815_v36 }
 0x2d3   :  { %v2417_v62 = vpop.f32.mrb[89].mxu1  ;;  %v2416_v32 = vadd.f32 %v2415_v30, %v4815_v36  ;;  %v2329_v35 = vadd.f32 %v2328_v31, %v4815_v36 }
 0x2d4   :  { %4230 = vmatprep.subr.bf16.mxu0 %v4229_v28  ;;  %4238 = vmatprep.subr.bf16.mxu1 %v4237_v29  ;;  %v2418_v41 = vadd.f32 %v2417_v62, %v4815_v36  ;;  %v2976_v47 = vmax.f32 %v2327_v14, 0.0 }
 0x2d5   :  { %v2332_v6 = vpop.f32.mrb[90].mxu0  ;;  %4232 = vmatpush1.bf16.msra.mxu0 %v4231_v25  ;;  %4240 = vmatpush1.bf16.msra.mxu1 %v4239_v26  ;;  %v2978_v51 = vmax.f32 %v2416_v32, 0.0  ;;  %v2977_v52 = vmax.f32 %v2329_v35, 0.0 }
 0x2d6   :  { %v2333_v42 = vadd.f32 %v2332_v6, %v4817_v37  ;;  %v2421_v43 = vpop.f32.mrb[90].mxu1  ;;  %v2334_v44 = vpop.f32.mrb[91].mxu0  ;;  %v2979_v55 = vmax.f32 %v2418_v41, 0.0 }
 0x2d7   :  { %v2422_v16 = vadd.f32 %v2421_v43, %v4817_v37  ;;  %v2335_v45 = vadd.f32 %v2334_v44, %v4817_v37  ;;  %v2423_v46 = vpop.f32.mrb[91].mxu1 }
 0x2d8   :  { %v2996_v49 = vmax.f32 %v2333_v42, 0.0  ;;  %v2424_v50 = vadd.f32 %v2423_v46, %v4817_v37  ;;  %4055 = vmatmul.mubr.msk.f32.vlgmr.msra.gmra.mrb[120].mxu0 %vm1099_vm1, %v5065_v38  ;;  %4056 = vmatmul.mubr.msk.f32.vlgmr.msra.gmra.mrb[120].mxu1 %vm1099_vm1, %v5065_v38 }
 0x2d9   :  { %v2998_v34 = vmax.f32 %v2422_v16, 0.0  ;;  %v2997_v53 = vmax.f32 %v2335_v45, 0.0  ;;  %v2338_v54 = vpop.f32.mrb[92].mxu0  ;;  %3264 = vmatprep.mubr.f32.mxu0 %v4365_v0  ;;  %3335 = vmatprep.mubr.f32.mxu1 %v4365_v0 }
 0x2da   :  { %v4243_v33 = vpack.c.bf16 %v2996_v49, %v2976_v47  ;;  %v2999_v56 = vmax.f32 %v2424_v50, 0.0  ;;  %v2427_v57 = vpop.f32.mrb[92].mxu1  ;;  %v2340_v58 = vpop.f32.mrb[93].mxu0  ;;  %v2339_v1 = vadd.f32 %v2338_v54, %v4827_v3 }
 0x2db   :  { %v4251_v59 = vpack.c.bf16 %v2998_v34, %v2978_v51  ;;  %v4241_v60 = vpack.c.bf16 %v2997_v53, %v2977_v52  ;;  %v2429_v61 = vpop.f32.mrb[93].mxu1  ;;  %v2428_v39 = vadd.f32 %v2427_v57, %v4827_v3  ;;  %v2341_v4 = vadd.f32 %v2340_v58, %v4827_v3 }
 0x2dc   :  { %v4249_v63 = vpack.c.bf16 %v2999_v56, %v2979_v55  ;;  %v2430_v8 = vadd.f32 %v2429_v61, %v4827_v3  ;;  %v3016_v15 = vmax.f32 %v2339_v1, 0.0 }
 0x2dd   :  { %v2344_v5 = vpop.f32.mrb[94].mxu0  ;;  %4242 = vmatprep.subr.bf16.mxu0 %v4241_v60  ;;  %v3018_v40 = vmax.f32 %v2428_v39, 0.0  ;;  %v3017_v19 = vmax.f32 %v2341_v4, 0.0 }
 0x2de   :  { %v2345_v9 = vadd.f32 %v2344_v5, %v4829_v7  ;;  %v2433_v10 = vpop.f32.mrb[94].mxu1  ;;  %4250 = vmatprep.subr.bf16.mxu1 %v4249_v63  ;;  %v2346_v11 = vpop.f32.mrb[95].mxu0  ;;  %4244 = vmatpush1.bf16.msra.mxu0 %v4243_v33  ;;  %v3019_v22 = vmax.f32 %v2430_v8, 0.0 }
 0x2df   :  { %v2434_v12 = vadd.f32 %v2433_v10, %v4829_v7  ;;  %v2347_v13 = vadd.f32 %v2346_v11, %v4829_v7  ;;  %v2435_v48 = vpop.f32.mrb[95].mxu1  ;;  %4252 = vmatpush1.bf16.msra.mxu1 %v4251_v59 }
 0x2e0   :  { %v3036_v17 = vmax.f32 %v2345_v9, 0.0  ;;  %v2436_v18 = vadd.f32 %v2435_v48, %v4829_v7 }
 0x2e1   :  { %v3038_v20 = vmax.f32 %v2434_v12, 0.0  ;;  %v3037_v21 = vmax.f32 %v2347_v13, 0.0 }
 0x2e2   :  { %v4247_v23 = vpack.c.bf16 %v3036_v17, %v3016_v15  ;;  %v3039_v24 = vmax.f32 %v2436_v18, 0.0  ;;  %v2504_v2 = vpop.f32.mrb[96].mxu0  ;;  %v2593_v25 = vpop.f32.mrb[96].mxu1 }
 0x2e3   :  { %v4255_v26 = vpack.c.bf16 %v3038_v20, %v3018_v40  ;;  %v4245_v27 = vpack.c.bf16 %v3037_v21, %v3017_v19  ;;  %v2506_v28 = vpop.f32.mrb[97].mxu0  ;;  %v2595_v29 = vpop.f32.mrb[97].mxu1  ;;  %v2505_v31 = vadd.f32 %v2504_v2, %v4815_v36  ;;  %v2594_v62 = vadd.f32 %v2593_v25, %v4815_v36 }
 0x2e4   :  { %v4253_v30 = vpack.c.bf16 %v3039_v24, %v3019_v22  ;;  %v2507_v14 = vadd.f32 %v2506_v28, %v4815_v36  ;;  %v2596_v32 = vadd.f32 %v2595_v29, %v4815_v36 }
 0x2e5   :  { %4246 = vmatprep.subr.bf16.mxu0 %v4245_v27  ;;  %v2980_v46 = vmax.f32 %v2505_v31, 0.0  ;;  %v2982_v47 = vmax.f32 %v2594_v62, 0.0 }
 0x2e6   :  { %v2510_v35 = vpop.f32.mrb[98].mxu0  ;;  %v2599_v6 = vpop.f32.mrb[98].mxu1  ;;  %4254 = vmatprep.subr.bf16.mxu1 %v4253_v30  ;;  %4248 = vmatpush1.bf16.msra.mxu0 %v4247_v23  ;;  %v2981_v51 = vmax.f32 %v2507_v14, 0.0  ;;  %v2983_v52 = vmax.f32 %v2596_v32, 0.0 }
 0x2e7   :  { %v2511_v41 = vadd.f32 %v2510_v35, %v4817_v37  ;;  %v2600_v42 = vadd.f32 %v2599_v6, %v4817_v37  ;;  %v2512_v43 = vpop.f32.mrb[99].mxu0  ;;  %v2601_v44 = vpop.f32.mrb[99].mxu1  ;;  %4256 = vmatpush1.bf16.msra.mxu1 %v4255_v26 }
 0x2e8   :  { %v2513_v16 = vadd.f32 %v2512_v43, %v4817_v37  ;;  %v2602_v45 = vadd.f32 %v2601_v44, %v4817_v37 }
 0x2e9   :  { %v3000_v49 = vmax.f32 %v2511_v41, 0.0  ;;  %v3002_v50 = vmax.f32 %v2600_v42, 0.0  ;;  %4057 = vmatmul.mubr.msk.f32.vlgmr.msra.gmra.mrb[122].mxu0 %vm1099_vm1, %v5065_v38 }
 0x2ea   :  { %v3001_v34 = vmax.f32 %v2513_v16, 0.0  ;;  %v3003_v53 = vmax.f32 %v2602_v45, 0.0  ;;  %v2516_v54 = vpop.f32.mrb[100].mxu0  ;;  %v2605_v55 = vpop.f32.mrb[100].mxu1  ;;  %4058 = vmatmul.mubr.msk.f32.vlgmr.msra.gmra.mrb[122].mxu1 %vm1099_vm1, %v5065_v38  ;;  %3406 = vmatprep.mubr.f32.mxu0 %v4365_v0 }
 0x2eb   :  { %v4259_v33 = vpack.c.bf16 %v3000_v49, %v2980_v46  ;;  %v4267_v56 = vpack.c.bf16 %v3002_v50, %v2982_v47  ;;  %v2518_v57 = vpop.f32.mrb[101].mxu0  ;;  %v2607_v58 = vpop.f32.mrb[101].mxu1  ;;  %3477 = vmatprep.mubr.f32.mxu1 %v4365_v0  ;;  %v2517_v61 = vadd.f32 %v2516_v54, %v4827_v3  ;;  %v2606_v63 = vadd.f32 %v2605_v55, %v4827_v3 }
 0x2ec   :  { %v4257_v59 = vpack.c.bf16 %v3001_v34, %v2981_v51  ;;  %v4265_v60 = vpack.c.bf16 %v3003_v53, %v2983_v52  ;;  %v2519_v1 = vadd.f32 %v2518_v57, %v4827_v3  ;;  %v2608_v39 = vadd.f32 %v2607_v58, %v4827_v3 }
 0x2ed   :  { %v3020_v48 = vmax.f32 %v2517_v61, 0.0  ;;  %v3022_v15 = vmax.f32 %v2606_v63, 0.0 }
 0x2ee   :  { %v2522_v4 = vpop.f32.mrb[102].mxu0  ;;  %v2611_v5 = vpop.f32.mrb[102].mxu1  ;;  %4258 = vmatprep.subr.bf16.mxu0 %v4257_v59  ;;  %4266 = vmatprep.subr.bf16.mxu1 %v4265_v60  ;;  %v3021_v40 = vmax.f32 %v2519_v1, 0.0  ;;  %v3023_v19 = vmax.f32 %v2608_v39, 0.0 }
 0x2ef   :  { %v2523_v8 = vadd.f32 %v2522_v4, %v4829_v7  ;;  %v2612_v9 = vadd.f32 %v2611_v5, %v4829_v7  ;;  %v2524_v10 = vpop.f32.mrb[103].mxu0  ;;  %v2613_v11 = vpop.f32.mrb[103].mxu1  ;;  %4260 = vmatpush1.bf16.msra.mxu0 %v4259_v33  ;;  %4268 = vmatpush1.bf16.msra.mxu1 %v4267_v56 }
 0x2f0   :  { %v2525_v12 = vadd.f32 %v2524_v10, %v4829_v7  ;;  %v2614_v13 = vadd.f32 %v2613_v11, %v4829_v7 }
 0x2f1   :  { %v3040_v17 = vmax.f32 %v2523_v8, 0.0  ;;  %v3042_v18 = vmax.f32 %v2612_v9, 0.0 }
 0x2f2   :  { %v3041_v20 = vmax.f32 %v2525_v12, 0.0  ;;  %v3043_v21 = vmax.f32 %v2614_v13, 0.0  ;;  %v2682_v22 = vpop.f32.mrb[104].mxu0 }
 0x2f3   :  { %v4263_v23 = vpack.c.bf16 %v3040_v17, %v3020_v48  ;;  %v4271_v24 = vpack.c.bf16 %v3042_v18, %v3022_v15  ;;  %v2771_v2 = vpop.f32.mrb[104].mxu1  ;;  %v2684_v25 = vpop.f32.mrb[105].mxu0  ;;  %v2683_v29 = vadd.f32 %v2682_v22, %v4815_v36 }
 0x2f4   :  { %v4261_v26 = vpack.c.bf16 %v3041_v20, %v3021_v40  ;;  %v4269_v27 = vpack.c.bf16 %v3043_v21, %v3023_v19  ;;  %v2773_v28 = vpop.f32.mrb[105].mxu1  ;;  %v2772_v30 = vadd.f32 %v2771_v2, %v4815_v36  ;;  %v2685_v31 = vadd.f32 %v2684_v25, %v4815_v36 }
 0x2f5   :  { %v2774_v14 = vadd.f32 %v2773_v28, %v4815_v36  ;;  %v2984_v44 = vmax.f32 %v2683_v29, 0.0 }
 0x2f6   :  { %v2688_v62 = vpop.f32.mrb[106].mxu0  ;;  %4262 = vmatprep.subr.bf16.mxu0 %v4261_v26  ;;  %4270 = vmatprep.subr.bf16.mxu1 %v4269_v27  ;;  %v2986_v46 = vmax.f32 %v2772_v30, 0.0  ;;  %v2985_v47 = vmax.f32 %v2685_v31, 0.0 }
 0x2f7   :  { %v2689_v32 = vadd.f32 %v2688_v62, %v4817_v37  ;;  %v2777_v35 = vpop.f32.mrb[106].mxu1  ;;  %v2690_v6 = vpop.f32.mrb[107].mxu0  ;;  %4264 = vmatpush1.bf16.msra.mxu0 %v4263_v23  ;;  %4272 = vmatpush1.bf16.msra.mxu1 %v4271_v24  ;;  %v2987_v52 = vmax.f32 %v2774_v14, 0.0 }
 0x2f8   :  { %v2778_v41 = vadd.f32 %v2777_v35, %v4817_v37  ;;  %v2691_v42 = vadd.f32 %v2690_v6, %v4817_v37  ;;  %v2779_v43 = vpop.f32.mrb[107].mxu1 }
 0x2f9   :  { %v3004_v16 = vmax.f32 %v2689_v32, 0.0  ;;  %v2780_v45 = vadd.f32 %v2779_v43, %v4817_v37 }
 0x2fa   :  { %v3006_v49 = vmax.f32 %v2778_v41, 0.0  ;;  %v3005_v50 = vmax.f32 %v2691_v42, 0.0  ;;  %v2694_v51 = vpop.f32.mrb[108].mxu0  ;;  %4059 = vmatmul.mubr.msk.f32.vlgmr.msra.gmra.mrb[124].mxu0 %vm1099_vm1, %v5065_v38  ;;  %4060 = vmatmul.mubr.msk.f32.vlgmr.msra.gmra.mrb[124].mxu1 %vm1099_vm1, %v5065_v38 }
 0x2fb   :  { %v4275_v34 = vpack.c.bf16 %v3004_v16, %v2984_v44  ;;  %v3007_v53 = vmax.f32 %v2780_v45, 0.0  ;;  %v2783_v54 = vpop.f32.mrb[108].mxu1  ;;  %v2696_v55 = vpop.f32.mrb[109].mxu0  ;;  %3548 = vmatprep.mubr.f32.mxu0 %v4365_v0  ;;  %3619 = vmatprep.mubr.f32.mxu1 %v4365_v0  ;;  %v2695_v59 = vadd.f32 %v2694_v51, %v4827_v3 }
 0x2fc   :  { %v4283_v33 = vpack.c.bf16 %v3006_v49, %v2986_v46  ;;  %v4273_v56 = vpack.c.bf16 %v3005_v50, %v2985_v47  ;;  %v2785_v57 = vpop.f32.mrb[109].mxu1  ;;  %v2784_v60 = vadd.f32 %v2783_v54, %v4827_v3  ;;  %v2697_v61 = vadd.f32 %v2696_v55, %v4827_v3 }
 0x2fd   :  { %v4281_v58 = vpack.c.bf16 %v3007_v53, %v2987_v52  ;;  %v2786_v1 = vadd.f32 %v2785_v57, %v4827_v3  ;;  %v3024_v11 = vmax.f32 %v2695_v59, 0.0 }
 0x2fe   :  { %v2700_v63 = vpop.f32.mrb[110].mxu0  ;;  %4274 = vmatprep.subr.bf16.mxu0 %v4273_v56  ;;  %v3026_v48 = vmax.f32 %v2784_v60, 0.0  ;;  %v3025_v15 = vmax.f32 %v2697_v61, 0.0 }
 0x2ff   :  { %v2701_v39 = vadd.f32 %v2700_v63, %v4829_v7  ;;  %v2789_v4 = vpop.f32.mrb[110].mxu1  ;;  %4282 = vmatprep.subr.bf16.mxu1 %v4281_v58  ;;  %v2702_v5 = vpop.f32.mrb[111].mxu0  ;;  %4276 = vmatpush1.bf16.msra.mxu0 %v4275_v34  ;;  %v3027_v19 = vmax.f32 %v2786_v1, 0.0 }
 0x300   :  { %v2790_v8 = vadd.f32 %v2789_v4, %v4829_v7  ;;  %v2703_v9 = vadd.f32 %v2702_v5, %v4829_v7  ;;  %v2791_v10 = vpop.f32.mrb[111].mxu1  ;;  %4284 = vmatpush1.bf16.msra.mxu1 %v4283_v33 }
 0x301   :  { %v3044_v12 = vmax.f32 %v2701_v39, 0.0  ;;  %v2792_v13 = vadd.f32 %v2791_v10, %v4829_v7 }
 0x302   :  { %v3046_v17 = vmax.f32 %v2790_v8, 0.0  ;;  %v3045_v18 = vmax.f32 %v2703_v9, 0.0  ;;  %v2860_v40 = vpop.f32.mrb[112].mxu0 }
 0x303   :  { %v4279_v20 = vpack.c.bf16 %v3044_v12, %v3024_v11  ;;  %v3047_v21 = vmax.f32 %v2792_v13, 0.0  ;;  %v2949_v22 = vpop.f32.mrb[112].mxu1  ;;  %v2862_v23 = vpop.f32.mrb[113].mxu0  ;;  %v2861_v27 = vadd.f32 %v2860_v40, %v4815_v36 }
 0x304   :  { %v4287_v24 = vpack.c.bf16 %v3046_v17, %v3026_v48  ;;  %v4277_v2 = vpack.c.bf16 %v3045_v18, %v3025_v15  ;;  %v2951_v25 = vpop.f32.mrb[113].mxu1  ;;  %v2950_v28 = vadd.f32 %v2949_v22, %v4815_v36  ;;  %v2863_v29 = vadd.f32 %v2862_v23, %v4815_v36 }
 0x305   :  { %v4285_v26 = vpack.c.bf16 %v3047_v21, %v3027_v19  ;;  %v2952_v31 = vadd.f32 %v2951_v25, %v4815_v36  ;;  %v2988_v42 = vmax.f32 %v2861_v27, 0.0  ;;  %v3795_v19 = vlaneseq }
 0x306   :  { %v2866_v30 = vpop.f32.mrb[114].mxu0  ;;  %4278 = vmatprep.subr.bf16.mxu0 %v4277_v2  ;;  %v2990_v16 = vmax.f32 %v2950_v28, 0.0  ;;  %v2989_v45 = vmax.f32 %v2863_v29, 0.0 }
 0x307   :  { %v2867_v62 = vadd.f32 %v2866_v30, %v4817_v37  ;;  %v2955_v14 = vpop.f32.mrb[114].mxu1  ;;  %4286 = vmatprep.subr.bf16.mxu1 %v4285_v26  ;;  %v2868_v32 = vpop.f32.mrb[115].mxu0  ;;  %4280 = vmatpush1.bf16.msra.mxu0 %v4279_v20  ;;  %v2991_v49 = vmax.f32 %v2952_v31, 0.0  ;;  %v5159_v20 = vstv %s5218_s6  ;;  %v3796_v22 = vshrl.u32 %v3795_v19, 7  ;;  %s4368_s6 = smov [#allocation6]  }
 0x308   :  { %v2956_v35 = vadd.f32 %v2955_v14, %v4817_v37  ;;  %v2869_v6 = vadd.f32 %v2868_v32, %v4817_v37  ;;  %v2957_v41 = vpop.f32.mrb[115].mxu1  ;;  %4288 = vmatpush1.bf16.msra.mxu1 %v4287_v24  ;;  %s3926_s27 = sshll.u32 %s4368_s6, 4  ;;  %vm3917_vm2 = vcmp.lt.s32.totalorder %v3795_v19, 512  ;;  %s3927_s27 = int_to_ptr.vmem [resolvable:$true] %s3926_s27 }
 0x309   :  { %v3008_v43 = vmax.f32 %v2867_v62, 0.0  ;;  %v2958_v44 = vadd.f32 %v2957_v41, %v4817_v37  ;;  %s4338_s28 = scalar_lea.vmem %s3927_s27, 320  ;;  %p4343_p9 = scmp.lt.s32.totalorder %s3927_s27, %s3927_s27 }
 0x30a   :  { %v3010_v46 = vmax.f32 %v2956_v35, 0.0  ;;  %v3009_v36 = vmax.f32 %v2869_v6, 0.0  ;;  %v2872_v47 = vpop.f32.mrb[116].mxu0  ;;  %4061 = vmatmul.mubr.msk.f32.vlgmr.msra.gmra.mrb[126].mxu0 %vm1099_vm1, %v5065_v38  ;;  %p4339_p8 = scmp.ne.s32.totalorder %s3927_s27, %s4338_s28  ;;  %p4344_p10 = scmp.lt.s32.totalorder %s4338_s28, %s4338_s28 }
 0x30b   :  { %v4291_v50 = vpack.c.bf16 %v3008_v43, %v2988_v42  ;;  %v3011_v51 = vmax.f32 %v2958_v44, 0.0  ;;  %v2961_v52 = vpop.f32.mrb[116].mxu1  ;;  %v2874_v34 = vpop.f32.mrb[117].mxu0  ;;  %4062 = vmatmul.mubr.msk.f32.vlgmr.msra.gmra.mrb[126].mxu1 %vm1099_vm1, %v5065_v38  ;;  %3690 = vmatprep.mubr.f32.mxu0 %v4365_v0  ;;  %v2873_v33 = vadd.f32 %v2872_v47, %v4827_v3 }
 0x30c   :  { %v4299_v53 = vpack.c.bf16 %v3010_v46, %v2990_v16  ;;  %v4289_v37 = vpack.c.bf16 %v3009_v36, %v2989_v45  ;;  %v2963_v54 = vpop.f32.mrb[117].mxu1  ;;  %3761 = vmatprep.mubr.f32.mxu1 %v4365_v0  ;;  %v2962_v56 = vadd.f32 %v2961_v52, %v4827_v3  ;;  %v2875_v57 = vadd.f32 %v2874_v34, %v4827_v3  ;;  %p4345_p11 = por %p4344_p10, %p4343_p9 }
 0x30d   :  { %v4297_v55 = vpack.c.bf16 %v3011_v51, %v2991_v49  ;;  %v2964_v59 = vadd.f32 %v2963_v54, %v4827_v3  ;;  %v3028_v4 = vmax.f32 %v2873_v33, 0.0 }
 0x30e   :  { %v2878_v58 = vpop.f32.mrb[118].mxu0  ;;  %4290 = vmatprep.subr.bf16.mxu0 %v4289_v37  ;;  %v3030_v9 = vmax.f32 %v2962_v56, 0.0  ;;  %v3029_v10 = vmax.f32 %v2875_v57, 0.0  ;;  %p4346_p12 = pnand %p4345_p11, %p4339_p8 }
 0x30f   :  { %v2879_v60 = vadd.f32 %v2878_v58, %v4829_v7  ;;  %v2967_v61 = vpop.f32.mrb[118].mxu1  ;;  %4298 = vmatprep.subr.bf16.mxu1 %v4297_v55  ;;  %v2880_v63 = vpop.f32.mrb[119].mxu0  ;;  %4292 = vmatpush1.bf16.msra.mxu0 %v4291_v50  ;;  %v3031_v12 = vmax.f32 %v2964_v59, 0.0 }
 0x310   :  { %v2968_v1 = vadd.f32 %v2967_v61, %v4829_v7  ;;  %v2881_v0 = vadd.f32 %v2880_v63, %v4829_v7  ;;  %v2969_v39 = vpop.f32.mrb[119].mxu1  ;;  %4300 = vmatpush1.bf16.msra.mxu1 %v4299_v53 }
 0x311   :  { %v3048_v5 = vmax.f32 %v2879_v60, 0.0  ;;  %v2970_v8 = vadd.f32 %v2969_v39, %v4829_v7  ;;  %v4367_v7 = vmov 1966171168  }
 0x312   :  { %v3050_v11 = vmax.f32 %v2968_v1, 0.0  ;;  %v3049_v3 = vmax.f32 %v2881_v0, 0.0  ;;  %v3793_v40 = vunpack.c.l.s4 %v4367_v7 }
 0x313   :  { %v4295_v13 = vpack.c.bf16 %v3048_v5, %v3028_v4  ;;  %v3051_v48 = vmax.f32 %v2970_v8, 0.0 }
 0x314   :  { %v4303_v15 = vpack.c.bf16 %v3050_v11, %v3030_v9  ;;  %v4293_v17 = vpack.c.bf16 %v3049_v3, %v3029_v10  ;;  %v3794_v21 = vunpack.c.0.s8 %v3793_v40 }
 0x315   :  { %v4301_v18 = vpack.c.bf16 %v3051_v48, %v3031_v12 }
 0x316   :  { %4294 = vmatprep.subr.bf16.mxu0 %v4293_v17  ;;  %v5165_v28 = vsub.s32 %v3794_v21, %v3796_v22 }
 0x317   :  { %4302 = vmatprep.subr.bf16.mxu1 %v4301_v18  ;;  %4296 = vmatpush1.bf16.msra.mxu0 %v4295_v13 }
 0x318   :  { %4304 = vmatpush1.bf16.msra.mxu1 %v4303_v15 }
 0x31a   :  { %4063 = vmatmul.mubr.msk.f32.vlgmr.msra.gmra.mrb[128].mxu0 %vm1099_vm1, %v5065_v38 }
 0x31b   :  { %4064 = vmatmul.mubr.msk.f32.vlgmr.msra.gmra.mrb[128].mxu1 %vm1099_vm1, %v5065_v38 }
 0x3ab   :  { %v3124_v23 = vpop.f32.mrb[120].mxu0  ;;  %v3195_v24 = vpop.f32.mrb[120].mxu1 }
 0x3ac   :  { %v3125_v2 = vadd.f32 %v3124_v23, %v5159_v20  ;;  %v3196_v25 = vadd.f32 %v3195_v24, %v5159_v20  ;;  %v3126_v26 = vpop.f32.mrb[121].mxu0  ;;  %v3197_v27 = vpop.f32.mrb[121].mxu1 }
 0x3ad   :  { %v3127_v38 = vadd.f32 %v3126_v26, %v5159_v20  ;;  %v3198_v29 = vadd.f32 %v3197_v27, %v5159_v20 }
 0x3af   :  { %v3788_v30 = vcombine.low %v3125_v2, %v3127_v38  ;;  %v3789_v31 = vcombine.low %v3196_v25, %v3198_v29 }
 0x3b1   :  { %v3798_v62 = vrot.slane %v3788_v30, %v5165_v28  ;;  %v3805_v14 = vrot.slane %v3789_v31, %v5165_v28 }
 0x3b3   :  { %v3820_v32 = vcombine.low %v3798_v62, %v3805_v14 }
 0x3b5   :  { %v3828_v50 = vrot.slane %v3820_v32, %v5165_v28 }
 0x3bc   :  { %v3266_v35 = vpop.f32.mrb[122].mxu0 }
 0x3bd   :  { %v3267_v6 = vadd.f32 %v3266_v35, %v5159_v20  ;;  %v3337_v41 = vpop.f32.mrb[122].mxu1  ;;  %v3268_v42 = vpop.f32.mrb[123].mxu0 }
 0x3be   :  { %v3338_v43 = vadd.f32 %v3337_v41, %v5159_v20  ;;  %v3269_v44 = vadd.f32 %v3268_v42, %v5159_v20  ;;  %v3339_v16 = vpop.f32.mrb[123].mxu1 }
 0x3bf   :  { %v3340_v45 = vadd.f32 %v3339_v16, %v5159_v20 }
 0x3c0   :  { %v3790_v46 = vcombine.low %v3267_v6, %v3269_v44 }
 0x3c1   :  { %v3791_v36 = vcombine.low %v3338_v43, %v3340_v45 }
 0x3c2   :  { %v3812_v47 = vrot.slane %v3790_v46, %v5165_v28 }
 0x3c3   :  { %v3819_v49 = vrot.slane %v3791_v36, %v5165_v28 }
 0x3c5   :  { %v3821_v51 = vcombine.low %v3812_v47, %v3819_v49 }
 0x3c7   :  { %v3835_v52 = vrot.slane %v3821_v51, %v5165_v28 }
 0x3c9   :  { %v3836_v34 = vcombine.low %v3828_v50, %v3835_v52 }
 0x3cb   :  { %3913 = vst [vmem:[#allocation6] sm:$0xff] %v3836_v34 }
 0x3cd   :  { %v3408_v53 = vpop.f32.mrb[124].mxu0  ;;  %v3479_v37 = vpop.f32.mrb[124].mxu1 }
 0x3ce   :  { %v3409_v54 = vadd.f32 %v3408_v53, %v5159_v20  ;;  %v3480_v55 = vadd.f32 %v3479_v37, %v5159_v20  ;;  %v3410_v33 = vpop.f32.mrb[125].mxu0  ;;  %v3481_v56 = vpop.f32.mrb[125].mxu1 }
 0x3cf   :  { %v3411_v57 = vadd.f32 %v3410_v33, %v5159_v20  ;;  %v3482_v58 = vadd.f32 %v3481_v56, %v5159_v20 }
 0x3d1   :  { %v3837_v59 = vcombine.low %v3409_v54, %v3411_v57  ;;  %v3838_v60 = vcombine.low %v3480_v55, %v3482_v58 }
 0x3d3   :  { %v3847_v61 = vrot.slane %v3837_v59, %v5165_v28  ;;  %v3854_v63 = vrot.slane %v3838_v60, %v5165_v28 }
 0x3d5   :  { %v3869_v1 = vcombine.low %v3847_v61, %v3854_v63 }
 0x3d7   :  { %v3877_v15 = vrot.slane %v3869_v1, %v5165_v28 }
 0x3dd   :  { %v3550_v0 = vpop.f32.mrb[126].mxu0 }
 0x3de   :  { %v3551_v39 = vadd.f32 %v3550_v0, %v5159_v20  ;;  %v3621_v4 = vpop.f32.mrb[126].mxu1  ;;  %v3552_v5 = vpop.f32.mrb[127].mxu0 }
 0x3df   :  { %v3622_v8 = vadd.f32 %v3621_v4, %v5159_v20  ;;  %v3553_v9 = vadd.f32 %v3552_v5, %v5159_v20  ;;  %v3623_v10 = vpop.f32.mrb[127].mxu1 }
 0x3e0   :  { %v3624_v11 = vadd.f32 %v3623_v10, %v5159_v20 }
 0x3e1   :  { %v3839_v3 = vcombine.low %v3551_v39, %v3553_v9 }
 0x3e2   :  { %v3840_v12 = vcombine.low %v3622_v8, %v3624_v11 }
 0x3e3   :  { %v3861_v13 = vrot.slane %v3839_v3, %v5165_v28 }
 0x3e4   :  { %v3868_v48 = vrot.slane %v3840_v12, %v5165_v28 }
 0x3e6   :  { %v3870_v17 = vcombine.low %v3861_v13, %v3868_v48 }
 0x3e8   :  { %v3884_v18 = vrot.slane %v3870_v17, %v5165_v28 }
 0x3ea   :  { %v3885_v7 = vcombine.low %v3877_v15, %v3884_v18 }
 0x3ec   :  { %3914 = vst [vmem:[#allocation6 + $0x8] sm:$0xff] %v3885_v7 }
 0x3ed   :  { %v3692_v40 = vpop.f32.mrb[128].mxu0 }
 0x3ee   :  { %v3693_v21 = vadd.f32 %v3692_v40, %v5159_v20  ;;  %v3763_v22 = vpop.f32.mrb[128].mxu1  ;;  %v3694_v23 = vpop.f32.mrb[129].mxu0 }
 0x3ef   :  { %v3764_v24 = vadd.f32 %v3763_v22, %v5159_v20  ;;  %v3695_v2 = vadd.f32 %v3694_v23, %v5159_v20  ;;  %v3765_v25 = vpop.f32.mrb[129].mxu1 }
 0x3f0   :  { %v3766_v26 = vadd.f32 %v3765_v25, %v5159_v20 }
 0x3f1   :  { %v3886_v27 = vcombine.low %v3693_v21, %v3695_v2 }
 0x3f2   :  { %v3887_v38 = vcombine.low %v3764_v24, %v3766_v26 }
 0x3f3   :  { %v3894_v29 = vrot.slane %v3886_v27, %v5165_v28 }
 0x3f4   :  { %v3901_v30 = vrot.slane %v3887_v38, %v5165_v28 }
 0x3f6   :  { %v3902_v31 = vcombine.low %v3894_v29, %v3901_v30 }
 0x3f8   :  { %v3909_v62 = vrot.slane %v3902_v31, %v5165_v28 }
 0x3fa   :  { %3919 = vst.msk [vmem:[#allocation6 + $0x10] sm:$0xf] %vm3917_vm2, %v3909_v62 }
 0x3fb   :  { %4349 = shalt.err (!%p4346_p12)
}
 0x3fc   :  { %s4350_s30 = scalar_lea.hbm %s5219_s7, 320 }
 0x3fd   :  { %p4351_p13 = scmp.ne.s32.totalorder %s5219_s7, %s4350_s30  ;;  %p4354_p0 = scmp.lt.u32.totalorder %s4350_s30, %s5219_s7 }
 0x3ff   :  { %p4356_p1 = pnand %p4354_p0, %p4351_p13 }
 0x401   :  { %4359 = shalt.err (!%p4356_p1)
}
 0x402   :  { %3929 = dma.vmem_to_hbm [thread:$0]  %s3927_s27, 320, %s5219_s7, [#allocation5]  }
 0x403   :  { %4362 = dma.done.wait [#allocation5], 320  }
 0x404   :  { %4363 = vsyncadd [#allocation5], 4294966976 }
 0x405   :  { %3933 = vsyncpa [#allocation4], 1 }
 0x406   :  { %3934 = vsyncpa [#allocation5], 1 }

</bundles_post_ra>
